<compile_context>
chip_gen: v7x
topology: tpu7x:2x2x1
jax: 0.10.0
libtpu: 0.0.40
codegen_flags: <defaults>
</compile_context>

<pallas_src>
import functools

import jax
import jax.numpy as jnp
from jax import lax
from jax.experimental import pallas as pl
from jax.experimental.pallas import tpu as pltpu


# ---------------------------------------------------------------------------
# Pallas kernels
# ---------------------------------------------------------------------------
def _conv_stats_kernel(ph_ref, w_ref, y_ref, stats_ref, *, taps, hs, ho, wo, cin):
    """One image: 4x4/s2 conv as 16 accumulated MXU matmuls + per-channel sum/sumsq."""
    hw = ho * wo
    cpad = y_ref.shape[-1]
    acc = jnp.zeros((hw, cpad), jnp.float32)
    for t, (pi, a, b) in enumerate(taps):
        r0 = pi * hs + a
        # (ho, wo, cin) shifted window of phase pi (bf16).
        slab = ph_ref[0, r0:r0 + ho, b:b + wo, :]
        # Round-trip through f32 so the (ho, wo, cin) -> (ho*wo, cin) collapse is a
        # layout-trivial reshape, then back to bf16 for the MXU operand.
        a2 = slab.astype(jnp.float32).reshape(hw, cin).astype(jnp.bfloat16)
        acc = acc + jnp.dot(a2, w_ref[t], preferred_element_type=jnp.float32)
    y_ref[0] = acc
    s = jnp.sum(acc, axis=0, keepdims=True)          # (1, cpad)
    ss = jnp.sum(acc * acc, axis=0, keepdims=True)   # (1, cpad)
    stats_ref[0] = jnp.concatenate([s, ss], axis=0)  # (2, cpad)


def _bn_lrelu_kernel(y_ref, scale_ref, shift_ref, o_ref, *, slope):
    """Streaming normalize: y*scale + shift, then LeakyReLU.  scale/shift precomputed."""
    yn = y_ref[...] * scale_ref[...] + shift_ref[...]
    o_ref[...] = jnp.where(yn >= 0, yn, slope * yn)


# ---------------------------------------------------------------------------
# Wrapper
# ---------------------------------------------------------------------------
def _pick_row_tile(m, cap=512):
    """Largest row-tile <= cap that divides m (multiple of 8), else the full m."""
    if m <= cap:
        return m
    for t in range(cap, 7, -1):
        if m % t == 0 and t % 8 == 0:
            return t
    return m


def block_d_forward(x_nchw, conv_w, gamma, beta, eps=1e-5, slope=0.2):
    """BlockD forward.  x_nchw: (N, Cin, H, W); conv_w: (Cout, Cin, 4, 4)."""
    n, cin, h, w = x_nchw.shape
    cout = conv_w.shape[0]
    kh = kw = 4
    stride, pad = 2, 1
    ho = (h + 2 * pad - kh) // stride + 1
    wo = (w + 2 * pad - kw) // stride + 1
    hw = ho * wo
    cpad = ((cout + 127) // 128) * 128          # lane-dense output channels

    # ---- space-to-depth phase split of the padded NHWC input (bf16, 1x traffic) ----
    x_nhwc = jnp.transpose(x_nchw, (0, 2, 3, 1))
    hp, wp = h + 2 * pad, w + 2 * pad
    hp2, wp2 = hp + (hp % 2), wp + (wp % 2)     # make padded extents even
    xp = jnp.pad(x_nhwc, ((0, 0), (pad, pad + hp2 - hp), (pad, pad + wp2 - wp), (0, 0)))
    hs, ws = hp2 // 2, wp2 // 2
    ph = xp.reshape(n, hs, 2, ws, 2, cin)
    ph = jnp.transpose(ph, (0, 2, 4, 1, 3, 5)).reshape(n, 4 * hs, ws, cin)
    ph = ph.astype(jnp.bfloat16)                # phases[n, (2p+q)*hs + r, c, ci]

    # ---- weights: (Cout, Cin, 4, 4) -> (16, Cin, Cpad) bf16, zero-padded channels ----
    wt = jnp.transpose(conv_w, (2, 3, 1, 0)).reshape(kh * kw, cin, cout)
    wt = jnp.pad(wt, ((0, 0), (0, 0), (0, cpad - cout))).astype(jnp.bfloat16)

    # tap t = 4*i + j  maps to phase pi = 2*(i%2) + (j%2), shifts (a, b) = (i//2, j//2)
    taps = []
    for i in range(kh):
        for j in range(kw):
            taps.append((2 * (i % 2) + (j % 2), i // 2, j // 2))
    taps = tuple(taps)

    conv_kernel = functools.partial(
        _conv_stats_kernel, taps=taps, hs=hs, ho=ho, wo=wo, cin=cin)
    y, stats = pl.pallas_call(
        conv_kernel,
        out_shape=(jax.ShapeDtypeStruct((n, hw, cpad), jnp.float32),
                   jax.ShapeDtypeStruct((n, 2, cpad), jnp.float32)),
        grid=(n,),
        in_specs=[
            pl.BlockSpec((1, 4 * hs, ws, cin), lambda b: (b, 0, 0, 0)),
            pl.BlockSpec((kh * kw, cin, cpad), lambda b: (0, 0, 0)),
        ],
        out_specs=(
            pl.BlockSpec((1, hw, cpad), lambda b: (b, 0, 0)),
            pl.BlockSpec((1, 2, cpad), lambda b: (b, 0, 0)),
        ),
        compiler_params=pltpu.CompilerParams(dimension_semantics=("parallel",)),
    )(ph, wt)

    # ---- tiny XLA reduction of per-image partial stats -> per-channel scale/shift ----
    m_total = float(n * hw)
    tot = jnp.sum(stats, axis=0)                        # (2, cpad)
    mean = tot[0] / m_total
    var = jnp.maximum(tot[1] / m_total - mean * mean, 0.0)   # biased var (PyTorch BN)
    inv = lax.rsqrt(var + eps)
    gamma_p = jnp.pad(gamma.astype(jnp.float32), (0, cpad - cout))
    beta_p = jnp.pad(beta.astype(jnp.float32), (0, cpad - cout))
    scale = (gamma_p * inv).reshape(1, cpad)
    shift = (beta_p - mean * gamma_p * inv).reshape(1, cpad)

    # ---- streaming normalize + LeakyReLU over lane-dense (TM, Cpad) tiles ----
    m = n * hw
    y2 = y.reshape(m, cpad)
    tm = _pick_row_tile(m, cap=512)
    out2 = pl.pallas_call(
        functools.partial(_bn_lrelu_kernel, slope=slope),
        out_shape=jax.ShapeDtypeStruct((m, cpad), jnp.float32),
        grid=(m // tm,),
        in_specs=[
            pl.BlockSpec((tm, cpad), lambda i: (i, 0)),
            pl.BlockSpec((1, cpad), lambda i: (0, 0)),
            pl.BlockSpec((1, cpad), lambda i: (0, 0)),
        ],
        out_specs=pl.BlockSpec((tm, cpad), lambda i: (i, 0)),
        compiler_params=pltpu.CompilerParams(dimension_semantics=("parallel",)),
    )(y2, scale, shift)

    out = out2.reshape(n, ho, wo, cpad)[..., :cout]
    return jnp.transpose(out, (0, 3, 1, 2))             # back to NCHW


# ---------------------------------------------------------------------------
# Pure-JAX references (correctness check)
# ---------------------------------------------------------------------------
def _reference(x_nchw, conv_w, gamma, beta, eps=1e-5, slope=0.2, round_bf16=False):
    xf = x_nchw.astype(jnp.float32)
    wf = conv_w.astype(jnp.float32)
    if round_bf16:  # match the kernel's bf16 operand rounding, keep f32 accumulation
        xf = xf.astype(jnp.bfloat16).astype(jnp.float32)
        wf = wf.astype(jnp.bfloat16).astype(jnp.float32)
    y = lax.conv_general_dilated(
        xf, wf, window_strides=(2, 2), padding=((1, 1), (1, 1)),
        dimension_numbers=("NCHW", "OIHW", "NCHW"))
    mean = jnp.mean(y, axis=(0, 2, 3), keepdims=True)
    var = jnp.mean((y - mean) ** 2, axis=(0, 2, 3), keepdims=True)
    yn = (y - mean) * lax.rsqrt(var + eps)
    yn = yn * gamma.reshape(1, -1, 1, 1) + beta.reshape(1, -1, 1, 1)
    return jnp.where(yn >= 0, yn, slope * yn)


if __name__ == "__main__":
    key = jax.random.PRNGKey(0)
    k_x, k_w, k_g, k_b = jax.random.split(key, 4)

    N, Cin, H, W = 2, 4, 16, 16
    Cout = 8

    x = jax.random.normal(k_x, (N, Cin, H, W), dtype=jnp.float32)
    conv_w = 0.05 * jax.random.normal(k_w, (Cout, Cin, 4, 4), dtype=jnp.float32)
    gamma = 1.0 + 0.1 * jax.random.normal(k_g, (Cout,), dtype=jnp.float32)
    beta = 0.1 * jax.random.normal(k_b, (Cout,), dtype=jnp.float32)

    fwd = jax.jit(block_d_forward)
    out = jax.block_until_ready(fwd(x, conv_w, gamma, beta))

    assert out.shape == (N, Cout, H // 2, W // 2), out.shape

    # Tight check vs a reference using the same bf16 operand rounding (f32 accumulation).
    ref_mixed = _reference(x, conv_w, gamma, beta, round_bf16=True)
    err = float(jnp.max(jnp.abs(out - ref_mixed)))
    assert err < 2e-3, f"mixed-precision reference mismatch: {err}"

    # Loose sanity check vs the pure-f32 reference (bf16 operand rounding tolerance).
    ref_f32 = _reference(x, conv_w, gamma, beta)
    err2 = float(jnp.max(jnp.abs(out - ref_f32)))
    assert err2 < 2e-1, f"f32 reference sanity check failed: {err2}"

    print("KERNEL_OK")
</pallas_src>

<mosaic_0001>
module attributes {stable_mosaic.version = 11 : i64} {
  func.func @_conv_stats_kernel(%arg0: i32, %arg1: memref<1x36x9x4xbf16, #tpu.memory_space<vmem>>, %arg2: memref<16x4x128xbf16, #tpu.memory_space<vmem>>, %arg3: memref<1x64x128xf32, #tpu.memory_space<vmem>>, %arg4: memref<1x2x128xf32, #tpu.memory_space<vmem>>) attributes {dimension_semantics = [#tpu.dimension_semantics<parallel>], iteration_bounds = array<i64: 2>, scalar_prefetch = 0 : i64, scratch_operands = 0 : i64, tpu.core_type = #tpu.core_type<tc>, window_params = [{transform_indices = @transform_0, window_bounds = array<i64: 1, 36, 9, 4>}, {pipeline_mode = #tpu.pipeline_mode<synchronous>, transform_indices = @transform_1, window_bounds = array<i64: 16, 4, 128>}, {transform_indices = @transform_2, window_bounds = array<i64: 1, 64, 128>}, {transform_indices = @transform_3, window_bounds = array<i64: 1, 2, 128>}]} {
    %cst = arith.constant 0.000000e+00 : f32
    %0 = vector.broadcast %cst : f32 to vector<64x128xf32>
    %c0 = arith.constant 0 : index
    %c0_0 = arith.constant 0 : index
    %c0_1 = arith.constant 0 : index
    %c0_2 = arith.constant 0 : index
    %1 = vector.load %arg1[%c0, %c0_0, %c0_1, %c0_2] : memref<1x36x9x4xbf16, #tpu.memory_space<vmem>>, vector<1x8x8x4xbf16>
    %2 = vector.shape_cast %1 : vector<1x8x8x4xbf16> to vector<8x8x4xbf16>
    %3 = arith.extf %2 : vector<8x8x4xbf16> to vector<8x8x4xf32>
    %4 = vector.shape_cast %3 : vector<8x8x4xf32> to vector<64x4xf32>
    %5 = arith.truncf %4 : vector<64x4xf32> to vector<64x4xbf16>
    %c0_3 = arith.constant 0 : index
    %c0_4 = arith.constant 0 : index
    %c0_5 = arith.constant 0 : index
    %6 = vector.load %arg2[%c0_3, %c0_4, %c0_5] : memref<16x4x128xbf16, #tpu.memory_space<vmem>>, vector<1x4x128xbf16>
    %7 = vector.shape_cast %6 : vector<1x4x128xbf16> to vector<4x128xbf16>
    %cst_6 = arith.constant dense<0.000000e+00> : vector<64x128xf32>
    %8 = tpu.matmul %5, %7, %cst_6 {dimension_numbers = #tpu.dot_dimension_numbers<[1], [0], [0], [1], [0, 0, 1, 1], [], []>} : vector<64x4xbf16>, vector<4x128xbf16>, vector<64x128xf32> -> vector<64x128xf32>
    %9 = arith.addf %0, %8 : vector<64x128xf32>
    %c0_7 = arith.constant 0 : index
    %c9 = arith.constant 9 : index
    %c0_8 = arith.constant 0 : index
    %c0_9 = arith.constant 0 : index
    %10 = vector.load %arg1[%c0_7, %c9, %c0_8, %c0_9] : memref<1x36x9x4xbf16, #tpu.memory_space<vmem>>, vector<1x8x8x4xbf16>
    %11 = vector.shape_cast %10 : vector<1x8x8x4xbf16> to vector<8x8x4xbf16>
    %12 = arith.extf %11 : vector<8x8x4xbf16> to vector<8x8x4xf32>
    %13 = vector.shape_cast %12 : vector<8x8x4xf32> to vector<64x4xf32>
    %14 = arith.truncf %13 : vector<64x4xf32> to vector<64x4xbf16>
    %c1 = arith.constant 1 : index
    %c0_10 = arith.constant 0 : index
    %c0_11 = arith.constant 0 : index
    %15 = vector.load %arg2[%c1, %c0_10, %c0_11] : memref<16x4x128xbf16, #tpu.memory_space<vmem>>, vector<1x4x128xbf16>
    %16 = vector.shape_cast %15 : vector<1x4x128xbf16> to vector<4x128xbf16>
    %cst_12 = arith.constant dense<0.000000e+00> : vector<64x128xf32>
    %17 = tpu.matmul %14, %16, %cst_12 {dimension_numbers = #tpu.dot_dimension_numbers<[1], [0], [0], [1], [0, 0, 1, 1], [], []>} : vector<64x4xbf16>, vector<4x128xbf16>, vector<64x128xf32> -> vector<64x128xf32>
    %18 = arith.addf %9, %17 : vector<64x128xf32>
    %c0_13 = arith.constant 0 : index
    %c0_14 = arith.constant 0 : index
    %c1_15 = arith.constant 1 : index
    %c0_16 = arith.constant 0 : index
    %19 = vector.load %arg1[%c0_13, %c0_14, %c1_15, %c0_16] : memref<1x36x9x4xbf16, #tpu.memory_space<vmem>>, vector<1x8x8x4xbf16>
    %20 = vector.shape_cast %19 : vector<1x8x8x4xbf16> to vector<8x8x4xbf16>
    %21 = arith.extf %20 : vector<8x8x4xbf16> to vector<8x8x4xf32>
    %22 = vector.shape_cast %21 : vector<8x8x4xf32> to vector<64x4xf32>
    %23 = arith.truncf %22 : vector<64x4xf32> to vector<64x4xbf16>
    %c2 = arith.constant 2 : index
    %c0_17 = arith.constant 0 : index
    %c0_18 = arith.constant 0 : index
    %24 = vector.load %arg2[%c2, %c0_17, %c0_18] : memref<16x4x128xbf16, #tpu.memory_space<vmem>>, vector<1x4x128xbf16>
    %25 = vector.shape_cast %24 : vector<1x4x128xbf16> to vector<4x128xbf16>
    %cst_19 = arith.constant dense<0.000000e+00> : vector<64x128xf32>
    %26 = tpu.matmul %23, %25, %cst_19 {dimension_numbers = #tpu.dot_dimension_numbers<[1], [0], [0], [1], [0, 0, 1, 1], [], []>} : vector<64x4xbf16>, vector<4x128xbf16>, vector<64x128xf32> -> vector<64x128xf32>
    %27 = arith.addf %18, %26 : vector<64x128xf32>
    %c0_20 = arith.constant 0 : index
    %c9_21 = arith.constant 9 : index
    %c1_22 = arith.constant 1 : index
    %c0_23 = arith.constant 0 : index
    %28 = vector.load %arg1[%c0_20, %c9_21, %c1_22, %c0_23] : memref<1x36x9x4xbf16, #tpu.memory_space<vmem>>, vector<1x8x8x4xbf16>
    %29 = vector.shape_cast %28 : vector<1x8x8x4xbf16> to vector<8x8x4xbf16>
    %30 = arith.extf %29 : vector<8x8x4xbf16> to vector<8x8x4xf32>
    %31 = vector.shape_cast %30 : vector<8x8x4xf32> to vector<64x4xf32>
    %32 = arith.truncf %31 : vector<64x4xf32> to vector<64x4xbf16>
    %c3 = arith.constant 3 : index
    %c0_24 = arith.constant 0 : index
    %c0_25 = arith.constant 0 : index
    %33 = vector.load %arg2[%c3, %c0_24, %c0_25] : memref<16x4x128xbf16, #tpu.memory_space<vmem>>, vector<1x4x128xbf16>
    %34 = vector.shape_cast %33 : vector<1x4x128xbf16> to vector<4x128xbf16>
    %cst_26 = arith.constant dense<0.000000e+00> : vector<64x128xf32>
    %35 = tpu.matmul %32, %34, %cst_26 {dimension_numbers = #tpu.dot_dimension_numbers<[1], [0], [0], [1], [0, 0, 1, 1], [], []>} : vector<64x4xbf16>, vector<4x128xbf16>, vector<64x128xf32> -> vector<64x128xf32>
    %36 = arith.addf %27, %35 : vector<64x128xf32>
    %c0_27 = arith.constant 0 : index
    %c18 = arith.constant 18 : index
    %c0_28 = arith.constant 0 : index
    %c0_29 = arith.constant 0 : index
    %37 = vector.load %arg1[%c0_27, %c18, %c0_28, %c0_29] : memref<1x36x9x4xbf16, #tpu.memory_space<vmem>>, vector<1x8x8x4xbf16>
    %38 = vector.shape_cast %37 : vector<1x8x8x4xbf16> to vector<8x8x4xbf16>
    %39 = arith.extf %38 : vector<8x8x4xbf16> to vector<8x8x4xf32>
    %40 = vector.shape_cast %39 : vector<8x8x4xf32> to vector<64x4xf32>
    %41 = arith.truncf %40 : vector<64x4xf32> to vector<64x4xbf16>
    %c4 = arith.constant 4 : index
    %c0_30 = arith.constant 0 : index
    %c0_31 = arith.constant 0 : index
    %42 = vector.load %arg2[%c4, %c0_30, %c0_31] : memref<16x4x128xbf16, #tpu.memory_space<vmem>>, vector<1x4x128xbf16>
    %43 = vector.shape_cast %42 : vector<1x4x128xbf16> to vector<4x128xbf16>
    %cst_32 = arith.constant dense<0.000000e+00> : vector<64x128xf32>
    %44 = tpu.matmul %41, %43, %cst_32 {dimension_numbers = #tpu.dot_dimension_numbers<[1], [0], [0], [1], [0, 0, 1, 1], [], []>} : vector<64x4xbf16>, vector<4x128xbf16>, vector<64x128xf32> -> vector<64x128xf32>
    %45 = arith.addf %36, %44 : vector<64x128xf32>
    %c0_33 = arith.constant 0 : index
    %c27 = arith.constant 27 : index
    %c0_34 = arith.constant 0 : index
    %c0_35 = arith.constant 0 : index
    %46 = vector.load %arg1[%c0_33, %c27, %c0_34, %c0_35] : memref<1x36x9x4xbf16, #tpu.memory_space<vmem>>, vector<1x8x8x4xbf16>
    %47 = vector.shape_cast %46 : vector<1x8x8x4xbf16> to vector<8x8x4xbf16>
    %48 = arith.extf %47 : vector<8x8x4xbf16> to vector<8x8x4xf32>
    %49 = vector.shape_cast %48 : vector<8x8x4xf32> to vector<64x4xf32>
    %50 = arith.truncf %49 : vector<64x4xf32> to vector<64x4xbf16>
    %c5 = arith.constant 5 : index
    %c0_36 = arith.constant 0 : index
    %c0_37 = arith.constant 0 : index
    %51 = vector.load %arg2[%c5, %c0_36, %c0_37] : memref<16x4x128xbf16, #tpu.memory_space<vmem>>, vector<1x4x128xbf16>
    %52 = vector.shape_cast %51 : vector<1x4x128xbf16> to vector<4x128xbf16>
    %cst_38 = arith.constant dense<0.000000e+00> : vector<64x128xf32>
    %53 = tpu.matmul %50, %52, %cst_38 {dimension_numbers = #tpu.dot_dimension_numbers<[1], [0], [0], [1], [0, 0, 1, 1], [], []>} : vector<64x4xbf16>, vector<4x128xbf16>, vector<64x128xf32> -> vector<64x128xf32>
    %54 = arith.addf %45, %53 : vector<64x128xf32>
    %c0_39 = arith.constant 0 : index
    %c18_40 = arith.constant 18 : index
    %c1_41 = arith.constant 1 : index
    %c0_42 = arith.constant 0 : index
    %55 = vector.load %arg1[%c0_39, %c18_40, %c1_41, %c0_42] : memref<1x36x9x4xbf16, #tpu.memory_space<vmem>>, vector<1x8x8x4xbf16>
    %56 = vector.shape_cast %55 : vector<1x8x8x4xbf16> to vector<8x8x4xbf16>
    %57 = arith.extf %56 : vector<8x8x4xbf16> to vector<8x8x4xf32>
    %58 = vector.shape_cast %57 : vector<8x8x4xf32> to vector<64x4xf32>
    %59 = arith.truncf %58 : vector<64x4xf32> to vector<64x4xbf16>
    %c6 = arith.constant 6 : index
    %c0_43 = arith.constant 0 : index
    %c0_44 = arith.constant 0 : index
    %60 = vector.load %arg2[%c6, %c0_43, %c0_44] : memref<16x4x128xbf16, #tpu.memory_space<vmem>>, vector<1x4x128xbf16>
    %61 = vector.shape_cast %60 : vector<1x4x128xbf16> to vector<4x128xbf16>
    %cst_45 = arith.constant dense<0.000000e+00> : vector<64x128xf32>
    %62 = tpu.matmul %59, %61, %cst_45 {dimension_numbers = #tpu.dot_dimension_numbers<[1], [0], [0], [1], [0, 0, 1, 1], [], []>} : vector<64x4xbf16>, vector<4x128xbf16>, vector<64x128xf32> -> vector<64x128xf32>
    %63 = arith.addf %54, %62 : vector<64x128xf32>
    %c0_46 = arith.constant 0 : index
    %c27_47 = arith.constant 27 : index
    %c1_48 = arith.constant 1 : index
    %c0_49 = arith.constant 0 : index
    %64 = vector.load %arg1[%c0_46, %c27_47, %c1_48, %c0_49] : memref<1x36x9x4xbf16, #tpu.memory_space<vmem>>, vector<1x8x8x4xbf16>
    %65 = vector.shape_cast %64 : vector<1x8x8x4xbf16> to vector<8x8x4xbf16>
    %66 = arith.extf %65 : vector<8x8x4xbf16> to vector<8x8x4xf32>
    %67 = vector.shape_cast %66 : vector<8x8x4xf32> to vector<64x4xf32>
    %68 = arith.truncf %67 : vector<64x4xf32> to vector<64x4xbf16>
    %c7 = arith.constant 7 : index
    %c0_50 = arith.constant 0 : index
    %c0_51 = arith.constant 0 : index
    %69 = vector.load %arg2[%c7, %c0_50, %c0_51] : memref<16x4x128xbf16, #tpu.memory_space<vmem>>, vector<1x4x128xbf16>
    %70 = vector.shape_cast %69 : vector<1x4x128xbf16> to vector<4x128xbf16>
    %cst_52 = arith.constant dense<0.000000e+00> : vector<64x128xf32>
    %71 = tpu.matmul %68, %70, %cst_52 {dimension_numbers = #tpu.dot_dimension_numbers<[1], [0], [0], [1], [0, 0, 1, 1], [], []>} : vector<64x4xbf16>, vector<4x128xbf16>, vector<64x128xf32> -> vector<64x128xf32>
    %72 = arith.addf %63, %71 : vector<64x128xf32>
    %c0_53 = arith.constant 0 : index
    %c1_54 = arith.constant 1 : index
    %c0_55 = arith.constant 0 : index
    %c0_56 = arith.constant 0 : index
    %73 = vector.load %arg1[%c0_53, %c1_54, %c0_55, %c0_56] : memref<1x36x9x4xbf16, #tpu.memory_space<vmem>>, vector<1x8x8x4xbf16>
    %74 = vector.shape_cast %73 : vector<1x8x8x4xbf16> to vector<8x8x4xbf16>
    %75 = arith.extf %74 : vector<8x8x4xbf16> to vector<8x8x4xf32>
    %76 = vector.shape_cast %75 : vector<8x8x4xf32> to vector<64x4xf32>
    %77 = arith.truncf %76 : vector<64x4xf32> to vector<64x4xbf16>
    %c8 = arith.constant 8 : index
    %c0_57 = arith.constant 0 : index
    %c0_58 = arith.constant 0 : index
    %78 = vector.load %arg2[%c8, %c0_57, %c0_58] : memref<16x4x128xbf16, #tpu.memory_space<vmem>>, vector<1x4x128xbf16>
    %79 = vector.shape_cast %78 : vector<1x4x128xbf16> to vector<4x128xbf16>
    %cst_59 = arith.constant dense<0.000000e+00> : vector<64x128xf32>
    %80 = tpu.matmul %77, %79, %cst_59 {dimension_numbers = #tpu.dot_dimension_numbers<[1], [0], [0], [1], [0, 0, 1, 1], [], []>} : vector<64x4xbf16>, vector<4x128xbf16>, vector<64x128xf32> -> vector<64x128xf32>
    %81 = arith.addf %72, %80 : vector<64x128xf32>
    %c0_60 = arith.constant 0 : index
    %c10 = arith.constant 10 : index
    %c0_61 = arith.constant 0 : index
    %c0_62 = arith.constant 0 : index
    %82 = vector.load %arg1[%c0_60, %c10, %c0_61, %c0_62] : memref<1x36x9x4xbf16, #tpu.memory_space<vmem>>, vector<1x8x8x4xbf16>
    %83 = vector.shape_cast %82 : vector<1x8x8x4xbf16> to vector<8x8x4xbf16>
    %84 = arith.extf %83 : vector<8x8x4xbf16> to vector<8x8x4xf32>
    %85 = vector.shape_cast %84 : vector<8x8x4xf32> to vector<64x4xf32>
    %86 = arith.truncf %85 : vector<64x4xf32> to vector<64x4xbf16>
    %c9_63 = arith.constant 9 : index
    %c0_64 = arith.constant 0 : index
    %c0_65 = arith.constant 0 : index
    %87 = vector.load %arg2[%c9_63, %c0_64, %c0_65] : memref<16x4x128xbf16, #tpu.memory_space<vmem>>, vector<1x4x128xbf16>
    %88 = vector.shape_cast %87 : vector<1x4x128xbf16> to vector<4x128xbf16>
    %cst_66 = arith.constant dense<0.000000e+00> : vector<64x128xf32>
    %89 = tpu.matmul %86, %88, %cst_66 {dimension_numbers = #tpu.dot_dimension_numbers<[1], [0], [0], [1], [0, 0, 1, 1], [], []>} : vector<64x4xbf16>, vector<4x128xbf16>, vector<64x128xf32> -> vector<64x128xf32>
    %90 = arith.addf %81, %89 : vector<64x128xf32>
    %c0_67 = arith.constant 0 : index
    %c1_68 = arith.constant 1 : index
    %c1_69 = arith.constant 1 : index
    %c0_70 = arith.constant 0 : index
    %91 = vector.load %arg1[%c0_67, %c1_68, %c1_69, %c0_70] : memref<1x36x9x4xbf16, #tpu.memory_space<vmem>>, vector<1x8x8x4xbf16>
    %92 = vector.shape_cast %91 : vector<1x8x8x4xbf16> to vector<8x8x4xbf16>
    %93 = arith.extf %92 : vector<8x8x4xbf16> to vector<8x8x4xf32>
    %94 = vector.shape_cast %93 : vector<8x8x4xf32> to vector<64x4xf32>
    %95 = arith.truncf %94 : vector<64x4xf32> to vector<64x4xbf16>
    %c10_71 = arith.constant 10 : index
    %c0_72 = arith.constant 0 : index
    %c0_73 = arith.constant 0 : index
    %96 = vector.load %arg2[%c10_71, %c0_72, %c0_73] : memref<16x4x128xbf16, #tpu.memory_space<vmem>>, vector<1x4x128xbf16>
    %97 = vector.shape_cast %96 : vector<1x4x128xbf16> to vector<4x128xbf16>
    %cst_74 = arith.constant dense<0.000000e+00> : vector<64x128xf32>
    %98 = tpu.matmul %95, %97, %cst_74 {dimension_numbers = #tpu.dot_dimension_numbers<[1], [0], [0], [1], [0, 0, 1, 1], [], []>} : vector<64x4xbf16>, vector<4x128xbf16>, vector<64x128xf32> -> vector<64x128xf32>
    %99 = arith.addf %90, %98 : vector<64x128xf32>
    %c0_75 = arith.constant 0 : index
    %c10_76 = arith.constant 10 : index
    %c1_77 = arith.constant 1 : index
    %c0_78 = arith.constant 0 : index
    %100 = vector.load %arg1[%c0_75, %c10_76, %c1_77, %c0_78] : memref<1x36x9x4xbf16, #tpu.memory_space<vmem>>, vector<1x8x8x4xbf16>
    %101 = vector.shape_cast %100 : vector<1x8x8x4xbf16> to vector<8x8x4xbf16>
    %102 = arith.extf %101 : vector<8x8x4xbf16> to vector<8x8x4xf32>
    %103 = vector.shape_cast %102 : vector<8x8x4xf32> to vector<64x4xf32>
    %104 = arith.truncf %103 : vector<64x4xf32> to vector<64x4xbf16>
    %c11 = arith.constant 11 : index
    %c0_79 = arith.constant 0 : index
    %c0_80 = arith.constant 0 : index
    %105 = vector.load %arg2[%c11, %c0_79, %c0_80] : memref<16x4x128xbf16, #tpu.memory_space<vmem>>, vector<1x4x128xbf16>
    %106 = vector.shape_cast %105 : vector<1x4x128xbf16> to vector<4x128xbf16>
    %cst_81 = arith.constant dense<0.000000e+00> : vector<64x128xf32>
    %107 = tpu.matmul %104, %106, %cst_81 {dimension_numbers = #tpu.dot_dimension_numbers<[1], [0], [0], [1], [0, 0, 1, 1], [], []>} : vector<64x4xbf16>, vector<4x128xbf16>, vector<64x128xf32> -> vector<64x128xf32>
    %108 = arith.addf %99, %107 : vector<64x128xf32>
    %c0_82 = arith.constant 0 : index
    %c19 = arith.constant 19 : index
    %c0_83 = arith.constant 0 : index
    %c0_84 = arith.constant 0 : index
    %109 = vector.load %arg1[%c0_82, %c19, %c0_83, %c0_84] : memref<1x36x9x4xbf16, #tpu.memory_space<vmem>>, vector<1x8x8x4xbf16>
    %110 = vector.shape_cast %109 : vector<1x8x8x4xbf16> to vector<8x8x4xbf16>
    %111 = arith.extf %110 : vector<8x8x4xbf16> to vector<8x8x4xf32>
    %112 = vector.shape_cast %111 : vector<8x8x4xf32> to vector<64x4xf32>
    %113 = arith.truncf %112 : vector<64x4xf32> to vector<64x4xbf16>
    %c12 = arith.constant 12 : index
    %c0_85 = arith.constant 0 : index
    %c0_86 = arith.constant 0 : index
    %114 = vector.load %arg2[%c12, %c0_85, %c0_86] : memref<16x4x128xbf16, #tpu.memory_space<vmem>>, vector<1x4x128xbf16>
    %115 = vector.shape_cast %114 : vector<1x4x128xbf16> to vector<4x128xbf16>
    %cst_87 = arith.constant dense<0.000000e+00> : vector<64x128xf32>
    %116 = tpu.matmul %113, %115, %cst_87 {dimension_numbers = #tpu.dot_dimension_numbers<[1], [0], [0], [1], [0, 0, 1, 1], [], []>} : vector<64x4xbf16>, vector<4x128xbf16>, vector<64x128xf32> -> vector<64x128xf32>
    %117 = arith.addf %108, %116 : vector<64x128xf32>
    %c0_88 = arith.constant 0 : index
    %c28 = arith.constant 28 : index
    %c0_89 = arith.constant 0 : index
    %c0_90 = arith.constant 0 : index
    %118 = vector.load %arg1[%c0_88, %c28, %c0_89, %c0_90] : memref<1x36x9x4xbf16, #tpu.memory_space<vmem>>, vector<1x8x8x4xbf16>
    %119 = vector.shape_cast %118 : vector<1x8x8x4xbf16> to vector<8x8x4xbf16>
    %120 = arith.extf %119 : vector<8x8x4xbf16> to vector<8x8x4xf32>
    %121 = vector.shape_cast %120 : vector<8x8x4xf32> to vector<64x4xf32>
    %122 = arith.truncf %121 : vector<64x4xf32> to vector<64x4xbf16>
    %c13 = arith.constant 13 : index
    %c0_91 = arith.constant 0 : index
    %c0_92 = arith.constant 0 : index
    %123 = vector.load %arg2[%c13, %c0_91, %c0_92] : memref<16x4x128xbf16, #tpu.memory_space<vmem>>, vector<1x4x128xbf16>
    %124 = vector.shape_cast %123 : vector<1x4x128xbf16> to vector<4x128xbf16>
    %cst_93 = arith.constant dense<0.000000e+00> : vector<64x128xf32>
    %125 = tpu.matmul %122, %124, %cst_93 {dimension_numbers = #tpu.dot_dimension_numbers<[1], [0], [0], [1], [0, 0, 1, 1], [], []>} : vector<64x4xbf16>, vector<4x128xbf16>, vector<64x128xf32> -> vector<64x128xf32>
    %126 = arith.addf %117, %125 : vector<64x128xf32>
    %c0_94 = arith.constant 0 : index
    %c19_95 = arith.constant 19 : index
    %c1_96 = arith.constant 1 : index
    %c0_97 = arith.constant 0 : index
    %127 = vector.load %arg1[%c0_94, %c19_95, %c1_96, %c0_97] : memref<1x36x9x4xbf16, #tpu.memory_space<vmem>>, vector<1x8x8x4xbf16>
    %128 = vector.shape_cast %127 : vector<1x8x8x4xbf16> to vector<8x8x4xbf16>
    %129 = arith.extf %128 : vector<8x8x4xbf16> to vector<8x8x4xf32>
    %130 = vector.shape_cast %129 : vector<8x8x4xf32> to vector<64x4xf32>
    %131 = arith.truncf %130 : vector<64x4xf32> to vector<64x4xbf16>
    %c14 = arith.constant 14 : index
    %c0_98 = arith.constant 0 : index
    %c0_99 = arith.constant 0 : index
    %132 = vector.load %arg2[%c14, %c0_98, %c0_99] : memref<16x4x128xbf16, #tpu.memory_space<vmem>>, vector<1x4x128xbf16>
    %133 = vector.shape_cast %132 : vector<1x4x128xbf16> to vector<4x128xbf16>
    %cst_100 = arith.constant dense<0.000000e+00> : vector<64x128xf32>
    %134 = tpu.matmul %131, %133, %cst_100 {dimension_numbers = #tpu.dot_dimension_numbers<[1], [0], [0], [1], [0, 0, 1, 1], [], []>} : vector<64x4xbf16>, vector<4x128xbf16>, vector<64x128xf32> -> vector<64x128xf32>
    %135 = arith.addf %126, %134 : vector<64x128xf32>
    %c0_101 = arith.constant 0 : index
    %c28_102 = arith.constant 28 : index
    %c1_103 = arith.constant 1 : index
    %c0_104 = arith.constant 0 : index
    %136 = vector.load %arg1[%c0_101, %c28_102, %c1_103, %c0_104] : memref<1x36x9x4xbf16, #tpu.memory_space<vmem>>, vector<1x8x8x4xbf16>
    %137 = vector.shape_cast %136 : vector<1x8x8x4xbf16> to vector<8x8x4xbf16>
    %138 = arith.extf %137 : vector<8x8x4xbf16> to vector<8x8x4xf32>
    %139 = vector.shape_cast %138 : vector<8x8x4xf32> to vector<64x4xf32>
    %140 = arith.truncf %139 : vector<64x4xf32> to vector<64x4xbf16>
    %c15 = arith.constant 15 : index
    %c0_105 = arith.constant 0 : index
    %c0_106 = arith.constant 0 : index
    %141 = vector.load %arg2[%c15, %c0_105, %c0_106] : memref<16x4x128xbf16, #tpu.memory_space<vmem>>, vector<1x4x128xbf16>
    %142 = vector.shape_cast %141 : vector<1x4x128xbf16> to vector<4x128xbf16>
    %cst_107 = arith.constant dense<0.000000e+00> : vector<64x128xf32>
    %143 = tpu.matmul %140, %142, %cst_107 {dimension_numbers = #tpu.dot_dimension_numbers<[1], [0], [0], [1], [0, 0, 1, 1], [], []>} : vector<64x4xbf16>, vector<4x128xbf16>, vector<64x128xf32> -> vector<64x128xf32>
    %144 = arith.addf %135, %143 : vector<64x128xf32>
    %c0_108 = arith.constant 0 : index
    %c0_109 = arith.constant 0 : index
    %c0_110 = arith.constant 0 : index
    %145 = vector.load %arg3[%c0_108, %c0_109, %c0_110] : memref<1x64x128xf32, #tpu.memory_space<vmem>>, vector<1x64x128xf32>
    %146 = vector.shape_cast %145 : vector<1x64x128xf32> to vector<64x128xf32>
    %147 = vector.shape_cast %144 : vector<64x128xf32> to vector<1x64x128xf32>
    tpu.vector_store %arg3[%c0_108, %c0_109, %c0_110], %147 {strides = array<i32>} : memref<1x64x128xf32, #tpu.memory_space<vmem>>, vector<1x64x128xf32>,
    %cst_111 = arith.constant dense<0.000000e+00> : vector<128xf32>
    %148 = vector.multi_reduction <add>, %144, %cst_111 [0] : vector<64x128xf32> to vector<128xf32>
    %149 = vector.shape_cast %148 : vector<128xf32> to vector<1x128xf32>
    %150 = arith.mulf %144, %144 : vector<64x128xf32>
    %cst_112 = arith.constant dense<0.000000e+00> : vector<128xf32>
    %151 = vector.multi_reduction <add>, %150, %cst_112 [0] : vector<64x128xf32> to vector<128xf32>
    %152 = vector.shape_cast %151 : vector<128xf32> to vector<1x128xf32>
    %153 = tpu.concatenate %149, %152 in 0 : vector<1x128xf32>, vector<1x128xf32> -> vector<2x128xf32>
    %c0_113 = arith.constant 0 : index
    %c0_114 = arith.constant 0 : index
    %c0_115 = arith.constant 0 : index
    %154 = vector.load %arg4[%c0_113, %c0_114, %c0_115] : memref<1x2x128xf32, #tpu.memory_space<vmem>>, vector<1x2x128xf32>
    %155 = vector.shape_cast %154 : vector<1x2x128xf32> to vector<2x128xf32>
    %156 = vector.shape_cast %153 : vector<2x128xf32> to vector<1x2x128xf32>
    tpu.vector_store %arg4[%c0_113, %c0_114, %c0_115], %156 {strides = array<i32>} : memref<1x2x128xf32, #tpu.memory_space<vmem>>, vector<1x2x128xf32>,
    return
  }
  func.func @transform_0(%arg0: i32) -> (i32, i32, i32, i32) {
    %c0_i32 = arith.constant 0 : i32
    %c0_i32_0 = arith.constant 0 : i32
    %c0_i32_1 = arith.constant 0 : i32
    %c0_i32_2 = arith.constant 0 : i32
    return %arg0, %c0_i32, %c0_i32_0, %c0_i32_1 : i32, i32, i32, i32
  }
  func.func @transform_1(%arg0: i32) -> (i32, i32, i32) {
    %c0_i32 = arith.constant 0 : i32
    %c0_i32_0 = arith.constant 0 : i32
    %c0_i32_1 = arith.constant 0 : i32
    %c0_i32_2 = arith.constant 0 : i32
    return %c0_i32, %c0_i32_0, %c0_i32_1 : i32, i32, i32
  }
  func.func @transform_2(%arg0: i32) -> (i32, i32, i32) {
    %c0_i32 = arith.constant 0 : i32
    %c0_i32_0 = arith.constant 0 : i32
    %c0_i32_1 = arith.constant 0 : i32
    return %arg0, %c0_i32, %c0_i32_0 : i32, i32, i32
  }
  func.func @transform_3(%arg0: i32) -> (i32, i32, i32) {
    %c0_i32 = arith.constant 0 : i32
    %c0_i32_0 = arith.constant 0 : i32
    %c0_i32_1 = arith.constant 0 : i32
    return %arg0, %c0_i32, %c0_i32_0 : i32, i32, i32
  }
}

module attributes {stable_mosaic.version = 11 : i64} {
  func.func @_bn_lrelu_kernel(%arg0: i32, %arg1: memref<128x128xf32, #tpu.memory_space<vmem>>, %arg2: memref<1x128xf32, #tpu.memory_space<vmem>>, %arg3: memref<1x128xf32, #tpu.memory_space<vmem>>, %arg4: memref<128x128xf32, #tpu.memory_space<vmem>>) attributes {dimension_semantics = [#tpu.dimension_semantics<parallel>], iteration_bounds = array<i64: 1>, scalar_prefetch = 0 : i64, scratch_operands = 0 : i64, tpu.core_type = #tpu.core_type<tc>, window_params = [{transform_indices = @transform_0, window_bounds = array<i64: 128, 128>}, {pipeline_mode = #tpu.pipeline_mode<synchronous>, transform_indices = @transform_1, window_bounds = array<i64: 1, 128>}, {pipeline_mode = #tpu.pipeline_mode<synchronous>, transform_indices = @transform_2, window_bounds = array<i64: 1, 128>}, {transform_indices = @transform_3, window_bounds = array<i64: 128, 128>}]} {
    %c0 = arith.constant 0 : index
    %c0_0 = arith.constant 0 : index
    %0 = vector.load %arg1[%c0, %c0_0] : memref<128x128xf32, #tpu.memory_space<vmem>>, vector<128x128xf32>
    %c0_1 = arith.constant 0 : index
    %c0_2 = arith.constant 0 : index
    %1 = vector.load %arg2[%c0_1, %c0_2] : memref<1x128xf32, #tpu.memory_space<vmem>>, vector<1x128xf32>
    %2 = vector.broadcast %1 : vector<1x128xf32> to vector<128x128xf32>
    %3 = arith.mulf %0, %2 : vector<128x128xf32>
    %c0_3 = arith.constant 0 : index
    %c0_4 = arith.constant 0 : index
    %4 = vector.load %arg3[%c0_3, %c0_4] : memref<1x128xf32, #tpu.memory_space<vmem>>, vector<1x128xf32>
    %5 = vector.broadcast %4 : vector<1x128xf32> to vector<128x128xf32>
    %6 = arith.addf %3, %5 : vector<128x128xf32>
    %cst = arith.constant 0.000000e+00 : f32
    %7 = vector.broadcast %cst : f32 to vector<128x128xf32>
    %8 = arith.cmpf oge, %6, %7 : vector<128x128xf32>
    %cst_5 = arith.constant 2.000000e-01 : f32
    %9 = vector.broadcast %cst_5 : f32 to vector<128x128xf32>
    %10 = arith.mulf %9, %6 : vector<128x128xf32>
    %11 = arith.select %8, %6, %10 : vector<128x128xi1>, vector<128x128xf32>
    %c0_6 = arith.constant 0 : index
    %c0_7 = arith.constant 0 : index
    %12 = vector.load %arg4[%c0_6, %c0_7] : memref<128x128xf32, #tpu.memory_space<vmem>>, vector<128x128xf32>
    tpu.vector_store %arg4[%c0_6, %c0_7], %11 {strides = array<i32>} : memref<128x128xf32, #tpu.memory_space<vmem>>, vector<128x128xf32>,
    return
  }
  func.func @transform_0(%arg0: i32) -> (i32, i32) {
    %c0_i32 = arith.constant 0 : i32
    %c0_i32_0 = arith.constant 0 : i32
    return %arg0, %c0_i32 : i32, i32
  }
  func.func @transform_1(%arg0: i32) -> (i32, i32) {
    %c0_i32 = arith.constant 0 : i32
    %c0_i32_0 = arith.constant 0 : i32
    %c0_i32_1 = arith.constant 0 : i32
    return %c0_i32, %c0_i32_0 : i32, i32
  }
  func.func @transform_2(%arg0: i32) -> (i32, i32) {
    %c0_i32 = arith.constant 0 : i32
    %c0_i32_0 = arith.constant 0 : i32
    %c0_i32_1 = arith.constant 0 : i32
    return %c0_i32, %c0_i32_0 : i32, i32
  }
  func.func @transform_3(%arg0: i32) -> (i32, i32) {
    %c0_i32 = arith.constant 0 : i32
    %c0_i32_0 = arith.constant 0 : i32
    return %arg0, %c0_i32 : i32, i32
  }
}

</mosaic_0001>

<bundles_post_ra>
// kernel: block_d_forward.3
= control target key start
LH: loop header
LB: loop body
LE: loop exit
PB: predicated region body
PF: predicated region fallthrough
CT: control target
= control target key end

     0   :  { %s305_s0 = inlined_call_operand.vmem [shape: f32[128,128], index: 0, kind: input, shape index: {}]   ;;  %s306_s1 = inlined_call_operand.vmem [shape: f32[1,128], index: 1, kind: input, shape index: {}]   ;;  %s307_s2 = inlined_call_operand.vmem [shape: f32[1,128], index: 2, kind: input, shape index: {}]   ;;  %s308_s3 = inlined_call_operand.vmem [shape: f32[128,128], index: 3, kind: output, shape index: {}]  }
   0x1   :  { %v14_v0 = vld [vmem:[%s305_s0] sm:$0xff]  ;;  %v15_v4 = vld [vmem:[%s305_s0 + $0x8] sm:$0xff]  ;;  %v16_v5 = vld [vmem:[%s305_s0 + $0x10] sm:$0xff] }
   0x2   :  { %v172_v1 = vld [vmem:[%s306_s1] ss:$0 sm:$0xff]  ;;  %v17_v6 = vld [vmem:[%s305_s0 + $0x18] sm:$0xff]  ;;  %v19_v11 = vld [vmem:[%s305_s0 + $0x28] sm:$0xff] }
   0x3   :  { %v177_v2 = vld [vmem:[%s307_s2] ss:$0 sm:$0xff]  ;;  %v37_v3 = vmul.f32 %v172_v1, %v14_v0  ;;  %v38_v7 = vmul.f32 %v172_v1, %v15_v4  ;;  %v39_v8 = vmul.f32 %v172_v1, %v16_v5  ;;  %v40_v9 = vmul.f32 %v172_v1, %v17_v6  ;;  %v20_v12 = vld [vmem:[%s305_s0 + $0x30] sm:$0xff]  ;;  %v21_v17 = vld [vmem:[%s305_s0 + $0x38] sm:$0xff] }
   0x4   :  { %v18_v10 = vld [vmem:[%s305_s0 + $0x20] sm:$0xff]  ;;  %v42_v15 = vmul.f32 %v172_v1, %v19_v11  ;;  %v43_v16 = vmul.f32 %v172_v1, %v20_v12  ;;  %v44_v21 = vmul.f32 %v172_v1, %v21_v17  ;;  %v23_v30 = vld [vmem:[%s305_s0 + $0x48] sm:$0xff]  ;;  %v24_v31 = vld [vmem:[%s305_s0 + $0x50] sm:$0xff] }
   0x5   :  { %v60_v13 = vadd.f32 %v177_v2, %v37_v3  ;;  %v41_v14 = vmul.f32 %v172_v1, %v18_v10  ;;  %v61_v18 = vadd.f32 %v177_v2, %v38_v7  ;;  %v62_v19 = vadd.f32 %v177_v2, %v39_v8  ;;  %v22_v25 = vld [vmem:[%s305_s0 + $0x40] sm:$0xff]  ;;  %v25_v43 = vld [vmem:[%s305_s0 + $0x58] sm:$0xff]  ;;  %v27_v45 = vld [vmem:[%s305_s0 + $0x68] sm:$0xff] }
   0x6   :  { %v63_v20 = vadd.f32 %v177_v2, %v40_v9  ;;  %v65_v24 = vadd.f32 %v177_v2, %v42_v15  ;;  %v66_v37 = vadd.f32 %v177_v2, %v43_v16  ;;  %v67_v38 = vadd.f32 %v177_v2, %v44_v21  ;;  %v26_v44 = vld [vmem:[%s305_s0 + $0x60] sm:$0xff]  ;;  %v28_v56 = vld [vmem:[%s305_s0 + $0x70] sm:$0xff]  ;;  %v29_v4 = vld [vmem:[%s305_s0 + $0x78] sm:$0xff] }
   0x7   :  { %vm76_vm0 = vcmp.ge.f32.partialorder %v60_v13, 0.0  ;;  %v92_v22 = vmul.f32 0.2, %v60_v13  ;;  %v64_v23 = vadd.f32 %v177_v2, %v41_v14  ;;  %vm77_vm1 = vcmp.ge.f32.partialorder %v61_v18, 0.0 }
   0x8   :  { %v93_v26 = vmul.f32 0.2, %v61_v18  ;;  %vm78_vm2 = vcmp.ge.f32.partialorder %v62_v19, 0.0  ;;  %v94_v27 = vmul.f32 0.2, %v62_v19  ;;  %vm79_vm3 = vcmp.ge.f32.partialorder %v63_v20, 0.0 }
   0x9   :  { %v108_v28 = vsel %vm76_vm0, %v60_v13, %v92_v22  ;;  %v95_v29 = vmul.f32 0.2, %v63_v20  ;;  %vm80_vm4 = vcmp.ge.f32.partialorder %v64_v23, 0.0  ;;  %v96_v34 = vmul.f32 0.2, %v64_v23 }
   0xa   :  { %124 = vst [vmem:[%s308_s3] sm:$0xff] %v108_v28  ;;  %v109_v32 = vsel %vm77_vm1, %v61_v18, %v93_v26  ;;  %v110_v33 = vsel %vm78_vm2, %v62_v19, %v94_v27  ;;  %vm81_vm5 = vcmp.ge.f32.partialorder %v65_v24, 0.0  ;;  %v97_v36 = vmul.f32 0.2, %v65_v24 }
   0xb   :  { %125 = vst [vmem:[%s308_s3 + $0x8] sm:$0xff] %v109_v32  ;;  %126 = vst [vmem:[%s308_s3 + $0x10] sm:$0xff] %v110_v33  ;;  %v111_v35 = vsel %vm79_vm3, %v63_v20, %v95_v29  ;;  %v112_v39 = vsel %vm80_vm4, %v64_v23, %v96_v34  ;;  %v45_v40 = vmul.f32 %v172_v1, %v22_v25  ;;  %vm82_vm6 = vcmp.ge.f32.partialorder %v66_v37, 0.0 }
   0xc   :  { %127 = vst [vmem:[%s308_s3 + $0x18] sm:$0xff] %v111_v35  ;;  %v46_v41 = vmul.f32 %v172_v1, %v23_v30  ;;  %v47_v42 = vmul.f32 %v172_v1, %v24_v31  ;;  %128 = vst [vmem:[%s308_s3 + $0x20] sm:$0xff] %v112_v39  ;;  %v113_v46 = vsel %vm81_vm5, %v65_v24, %v97_v36  ;;  %v98_v47 = vmul.f32 0.2, %v66_v37 }
   0xd   :  { %vm83_vm7 = vcmp.ge.f32.partialorder %v67_v38, 0.0  ;;  %129 = vst [vmem:[%s308_s3 + $0x28] sm:$0xff] %v113_v46  ;;  %v99_v48 = vmul.f32 0.2, %v67_v38  ;;  %v68_v49 = vadd.f32 %v177_v2, %v45_v40  ;;  %v48_v53 = vmul.f32 %v172_v1, %v25_v43 }
   0xe   :  { %v69_v50 = vadd.f32 %v177_v2, %v46_v41  ;;  %v70_v51 = vadd.f32 %v177_v2, %v47_v42  ;;  %v114_v52 = vsel %vm82_vm6, %v66_v37, %v98_v47  ;;  %v49_v54 = vmul.f32 %v172_v1, %v26_v44 }
   0xf   :  { %v50_v55 = vmul.f32 %v172_v1, %v27_v45  ;;  %130 = vst [vmem:[%s308_s3 + $0x30] sm:$0xff] %v114_v52  ;;  %v115_v57 = vsel %vm83_vm7, %v67_v38, %v99_v48  ;;  %vm84_vm8 = vcmp.ge.f32.partialorder %v68_v49, 0.0  ;;  %v100_v58 = vmul.f32 0.2, %v68_v49 }
  0x10   :  { %vm85_vm9 = vcmp.ge.f32.partialorder %v69_v50, 0.0  ;;  %131 = vst [vmem:[%s308_s3 + $0x38] sm:$0xff] %v115_v57  ;;  %v101_v59 = vmul.f32 0.2, %v69_v50  ;;  %vm86_vm10 = vcmp.ge.f32.partialorder %v70_v51, 0.0  ;;  %v71_v61 = vadd.f32 %v177_v2, %v48_v53 }
  0x11   :  { %v102_v60 = vmul.f32 0.2, %v70_v51  ;;  %v116_v62 = vsel %vm84_vm8, %v68_v49, %v100_v58  ;;  %v72_v63 = vadd.f32 %v177_v2, %v49_v54  ;;  %v73_v0 = vadd.f32 %v177_v2, %v50_v55 }
  0x12   :  { %v51_v3 = vmul.f32 %v172_v1, %v28_v56  ;;  %132 = vst [vmem:[%s308_s3 + $0x40] sm:$0xff] %v116_v62  ;;  %v117_v5 = vsel %vm85_vm9, %v69_v50, %v101_v59  ;;  %vm87_vm11 = vcmp.ge.f32.partialorder %v71_v61, 0.0  ;;  %v103_v7 = vmul.f32 0.2, %v71_v61 }
  0x13   :  { %v118_v6 = vsel %vm86_vm10, %v70_v51, %v102_v60  ;;  %133 = vst [vmem:[%s308_s3 + $0x48] sm:$0xff] %v117_v5  ;;  %vm88_vm12 = vcmp.ge.f32.partialorder %v72_v63, 0.0  ;;  %v104_v8 = vmul.f32 0.2, %v72_v63  ;;  %vm89_vm13 = vcmp.ge.f32.partialorder %v73_v0, 0.0 }
  0x14   :  { %134 = vst [vmem:[%s308_s3 + $0x50] sm:$0xff] %v118_v6  ;;  %v105_v9 = vmul.f32 0.2, %v73_v0  ;;  %v119_v10 = vsel %vm87_vm11, %v71_v61, %v103_v7  ;;  %v74_v11 = vadd.f32 %v177_v2, %v51_v3  ;;  %v52_v12 = vmul.f32 %v172_v1, %v29_v4 }
  0x15   :  { %135 = vst [vmem:[%s308_s3 + $0x58] sm:$0xff] %v119_v10  ;;  %v120_v13 = vsel %vm88_vm12, %v72_v63, %v104_v8 }
  0x16   :  { %v121_v14 = vsel %vm89_vm13, %v73_v0, %v105_v9  ;;  %136 = vst [vmem:[%s308_s3 + $0x60] sm:$0xff] %v120_v13  ;;  %vm90_vm14 = vcmp.ge.f32.partialorder %v74_v11, 0.0  ;;  %v106_v15 = vmul.f32 0.2, %v74_v11  ;;  %v75_v16 = vadd.f32 %v177_v2, %v52_v12 }
  0x17   :  { %137 = vst [vmem:[%s308_s3 + $0x68] sm:$0xff] %v121_v14 }
  0x18   :  { %v122_v17 = vsel %vm90_vm14, %v74_v11, %v106_v15  ;;  %vm91_vm15 = vcmp.ge.f32.partialorder %v75_v16, 0.0  ;;  %v107_v1 = vmul.f32 0.2, %v75_v16 }
  0x19   :  { %138 = vst [vmem:[%s308_s3 + $0x70] sm:$0xff] %v122_v17 }
  0x1a   :  { %v123_v18 = vsel %vm91_vm15, %v75_v16, %v107_v1 }
  0x1b   :  { %139 = vst [vmem:[%s308_s3 + $0x78] sm:$0xff] %v123_v18 }

// kernel: block_d_forward.2
= control target key start
LH: loop header
LB: loop body
LE: loop exit
PB: predicated region body
PF: predicated region fallthrough
CT: control target
= control target key end

     0   :  { %s3315_s12 = smov 0   ;;  %s3795_s0 = inlined_call_operand.vmem [shape: bf16[2,36,9,4], index: 0, kind: input, shape index: {}]   ;;  %s3796_s1 = inlined_call_operand.vmem [shape: bf16[16,4,128], index: 1, kind: input, shape index: {}]   ;;  %s3797_s2 = inlined_call_operand.vmem [shape: f32[2,64,128], index: 2, kind: output, shape index: {0}]   ;;  %s3798_s3 = inlined_call_operand.vmem [shape: f32[2,2,128], index: 3, kind: output, shape index: {1}]  }
   0x1 LB: > { %s2579_s13 = sadd.s32 4294967295, %s3293_s12   ;;  %p2583_p0 = scmp.ge.s32.totalorder %s3293_s12, 1  ;;  %s3293_s12 = sphi %s3315_s12, %s14_s12  }
   0x2   : > { %p140_p1 = scmp.lt.s32.totalorder %s3293_s12, 3 }
   0x4   : > { %p141_p2 = pnand %p2583_p0, %p140_p1 }
   0x5   : > { %v2604_v0 = vld [vmem:[%s3796_s1 + $0x2] sm:$0x3] (!%p141_p2)  ;;  %vm240_vm0 = vcmask (!%p141_p2), 1041408   ;;  %v2727_v1 = vld [vmem:[%s3796_s1 + $0x10] sm:$0x3] (!%p141_p2)  ;;  %p168_p3 = scmp.lt.s32.totalorder (!%p141_p2), %s2579_s13, 1 }
   0x6   : > { %144 = sbr.rel (%p141_p2) target bundleno = 380 (0x17c), region = 28  ;;  %3230 = vmatprep.subr.msk.bf16.mxu1 (!%p141_p2), %vm240_vm0, %v2604_v0  ;;  %3238 = vmatprep.subr.msk.bf16.mxu0 (!%p141_p2), %vm240_vm0, %v2727_v1  ;;  %v242_v2 = vsel (!%p141_p2), %vm240_vm0, %v2604_v0, 0  ;;  %v1344_v3 = vsel (!%p141_p2), %vm240_vm0, %v2727_v1, 0  ;;  %v203_v4 = vld [vmem:[%s3796_s1] sm:$0x3] (!%p141_p2)  ;;  %vm227_vm1 = vcmask (!%p141_p2), 31744  }
   0x7   : > { %2951 = vmatpush3.bf16.msra.mxu1 (!%p141_p2), %v242_v2  ;;  %3031 = vmatpush3.bf16.msra.mxu0 (!%p141_p2), %v1344_v3  ;;  %v2744_v5 = vld [vmem:[%s3796_s1 + $0x12] sm:$0x3] (!%p141_p2)  ;;  %v322_v6 = vsel (!%p141_p2), %vm240_vm0, %v203_v4, 0  ;;  %v2613_v11 = vld [vmem:[%s3796_s1 + $0x4] sm:$0x3] (!%p141_p2)  ;;  %vm437_vm2 = vcmask (!%p141_p2), 1046528  }
   0x8   : > { %3231 = vmatprep.subr.msk.bf16.mxu1 (!%p141_p2), %vm240_vm0, %v203_v4  ;;  %3239 = vmatprep.subr.msk.bf16.mxu0 (!%p141_p2), %vm240_vm0, %v2744_v5  ;;  %v1455_v7 = vsel (!%p141_p2), %vm240_vm0, %v2744_v5, 0  ;;  %v2765_v13 = vld [vmem:[%s3796_s1 + $0x14] sm:$0x3] (!%p141_p2)  ;;  %v3374_v17 = vld [vmem:[%s3796_s1 + $0x6] sm:$0x3] (!%p141_p2)  ;;  %v489_v24 = vsel (!%p141_p2), %vm240_vm0, %v2613_v11, 0 }
   0x9   : > { %v3379_v18 = vld [vmem:[%s3796_s1 + $0x16] sm:$0x3] (!%p141_p2)  ;;  %v3386_v20 = vld [vmem:[%s3796_s1 + $0x8] sm:$0x3] (!%p141_p2)  ;;  %v3391_v21 = vld [vmem:[%s3796_s1 + $0x18] sm:$0x3] (!%p141_p2) }
   0xa   : > { %v1629_v25 = vsel (!%p141_p2), %vm240_vm0, %v2765_v13, 0  ;;  %v3400_v26 = vsel (!%p141_p2), %vm240_vm0, %v3374_v17, 0  ;;  %v3404_v27 = vsel (!%p141_p2), %vm240_vm0, %v3379_v18, 0  ;;  %v3410_v28 = vsel (!%p141_p2), %vm240_vm0, %v3386_v20, 0 }
   0xb   : > { %v3414_v29 = vsel (!%p141_p2), %vm240_vm0, %v3391_v21, 0  ;;  %vm2490_vm3 = vcmask (!%p141_p2), 1040384  }
   0xd   : > { %s3800_s13 = smov (!%p168_p3, %s2579_s13), 1 }
   0xe   : > { %s3246_s22 = smul.u32 288, %s3800_s13  ;;  %s2587_s29 = sshll.u32 %s3800_s13, 1 }
   0xf   : > { %s181_s5 = scalar_lea.vmem %s3798_s3, %s2587_s29 }
  0x10   : > { %s3347_s25 = scalar_lea.vmem %s3795_s0, %s3246_s22 }
  0x11   : > { %v3255_v8 = vld [vmem:[%s3347_s25 + $0x48] ss:$8 sps:$4 sm:$0xff]   ;;  %v3257_v10 = vld [vmem:[%s3347_s25 + $0x58] ss:$8 sps:$4 sm:$0xff]   ;;  %v390_v33 = vld [vmem:[%s3347_s25 + $0x4] sm:$0x1] }
  0x12   : > { %v3256_v9 = vld [vmem:[%s3347_s25 + $0x8] ss:$8 sps:$4 sm:$0xff]   ;;  %2952 = vmatprep.mubr.msk.bf16.mxu1 %vm227_vm1, %v3255_v8  ;;  %v3258_v12 = vld [vmem:[%s3347_s25 + $0x18] ss:$8 sps:$4 sm:$0xff]   ;;  %v392_v34 = vld [vmem:[%s3347_s25 + $0xc] sm:$0x1]  ;;  %v406_v36 = vunpack.c.l.bf16 %v390_v33 }
  0x13   : > { %3032 = vmatprep.mubr.msk.bf16.mxu0 %vm227_vm1, %v3256_v9  ;;  %2953 = vmatmul.mubr.msk.bf16.vlgmr.msra.gmra.mrb[0].mxu1 %vm227_vm1, %v3257_v10  ;;  %v3259_v14 = vld [vmem:[%s3347_s25 + $0x68] ss:$8 sps:$4 sm:$0xff]   ;;  %v3261_v16 = vld [vmem:[%s3347_s25 + $0x78] ss:$8 sps:$4 sm:$0xff]   ;;  %v408_v38 = vunpack.c.l.bf16 %v392_v34  ;;  %v2750_v40 = vld [vmem:[%s3347_s25 + $0xc] sm:$0x1] }
  0x14   : > { %2961 = vmatpush3.bf16.msra.mxu1 %v322_v6  ;;  %3033 = vmatmul.mubr.msk.bf16.vlgmr.msra.gmra.mrb[0].mxu0 %vm227_vm1, %v3258_v12  ;;  %v3260_v15 = vld [vmem:[%s3347_s25 + $0x28] ss:$8 sps:$4 sm:$0xff]   ;;  %v3262_v19 = vld [vmem:[%s3347_s25 + $0x38] ss:$8 sps:$4 sm:$0xff]   ;;  %v2752_v41 = vld [vmem:[%s3347_s25 + $0x14] sm:$0x1]  ;;  %v1547_v44 = vunpack.c.l.bf16 %v2750_v40 }
  0x15   : > { %3041 = vmatpush3.bf16.msra.mxu0 %v1455_v7  ;;  %2956 = vmatprep.mubr.msk.bf16.mxu1 %vm227_vm1, %v3259_v14  ;;  %v3263_v22 = vld [vmem:[%s3347_s25] ss:$8 sps:$4 sm:$0xff]   ;;  %v3264_v23 = vld [vmem:[%s3347_s25 + $0x50] ss:$8 sps:$4 sm:$0xff]   ;;  %v1549_v46 = vunpack.c.l.bf16 %v2752_v41  ;;  %v394_v48 = vld [vmem:[%s3347_s25 + $0x14] sm:$0x1] }
  0x16   : > { %3036 = vmatprep.mubr.msk.bf16.mxu0 %vm227_vm1, %v3260_v15  ;;  %3232 = vmatprep.subr.msk.bf16.mxu1 %vm240_vm0, %v2613_v11  ;;  %v3265_v30 = vld [vmem:[%s3347_s25 + $0x10] ss:$8 sps:$4 sm:$0xff]   ;;  %v3266_v31 = vld [vmem:[%s3347_s25 + $0x60] ss:$8 sps:$4 sm:$0xff]   ;;  %v439_v51 = vrot.slane %v406_v36, 1  ;;  %v442_v53 = vrot.slane %v408_v38, 1  ;;  %v410_v62 = vunpack.c.l.bf16 %v394_v48 }
  0x17   : > { %3240 = vmatprep.subr.msk.bf16.mxu0 %vm240_vm0, %v2765_v13  ;;  %v389_v32 = vld [vmem:[%s3347_s25] ss:$8 sps:$4 sm:$0xff]   ;;  %v393_v47 = vld [vmem:[%s3347_s25 + $0x10] ss:$8 sps:$4 sm:$0xff]   ;;  %v1579_v55 = vrot.slane %v1547_v44, 1  ;;  %v1582_v57 = vrot.slane %v1549_v46, 1 }
  0x18   : > { %v405_v35 = vunpack.c.l.bf16 %v389_v32  ;;  %v407_v37 = vunpack.c.h.bf16 %v389_v32  ;;  %v2749_v39 = vld [vmem:[%s3347_s25 + $0x8] ss:$8 sps:$4 sm:$0xff]   ;;  %v396_v58 = vld [vmem:[%s3347_s25 + $0x1c] sm:$0x1]  ;;  %v409_v61 = vunpack.c.l.bf16 %v393_v47  ;;  %v2753_v63 = vld [vmem:[%s3347_s25 + $0x18] ss:$8 sps:$4 sm:$0xff]   ;;  %v411_v4 = vunpack.c.h.bf16 %v393_v47 }
  0x19   : > { %v3267_v42 = vld [vmem:[%s3347_s25 + $0x20] ss:$8 sps:$4 sm:$0xff]   ;;  %v1546_v43 = vunpack.c.l.bf16 %v2749_v39  ;;  %v1548_v45 = vunpack.c.h.bf16 %v2749_v39  ;;  %v3268_v49 = vld [vmem:[%s3347_s25 + $0x70] ss:$8 sps:$4 sm:$0xff]   ;;  %v2754_v0 = vld [vmem:[%s3347_s25 + $0x1c] sm:$0x1]  ;;  %v412_v8 = vunpack.c.l.bf16 %v396_v58  ;;  %v1550_v14 = vunpack.c.l.bf16 %v2753_v63 }
  0x1a   : > { %v438_v50 = vrot.slane %v405_v35, 1  ;;  %v441_v52 = vrot.slane %v407_v37, 1  ;;  %v2756_v5 = vld [vmem:[%s3347_s25 + $0x24] sm:$0x1]  ;;  %v397_v6 = vld [vmem:[%s3347_s25 + $0x20] ss:$8 sps:$4 sm:$0xff]   ;;  %v1551_v15 = vunpack.c.l.bf16 %v2754_v0 }
  0x1b   : > { %2957 = vmatmul.mubr.msk.bf16.gmra.mrb[4].mxu1 %vm227_vm1, %v3261_v16  ;;  %v1578_v54 = vrot.slane %v1546_v43, 1  ;;  %v1581_v56 = vrot.slane %v1548_v45, 1  ;;  %v444_v9 = vrot.slane %v409_v61, 1  ;;  %v445_v10 = vrot.slane %v410_v62, 1  ;;  %v398_v11 = vld [vmem:[%s3347_s25 + $0x24] sm:$0x1] }
  0x1c   : > { %3037 = vmatmul.mubr.msk.bf16.gmra.mrb[4].mxu0 %vm227_vm1, %v3262_v19  ;;  %2962 = vmatprep.mubr.msk.bf16.mxu1 %vm227_vm1, %v3263_v22  ;;  %v440_v59 = vsel %vm437_vm2, %v438_v50, %v439_v51  ;;  %v443_v60 = vsel %vm437_vm2, %v441_v52, %v442_v53  ;;  %v3269_v12 = vld [vmem:[%s3347_s25 + $0x30] ss:$8 sps:$4 sm:$0xff]   ;;  %v447_v13 = vrot.slane %v411_v4, 1  ;;  %v1552_v16 = vunpack.c.h.bf16 %v2753_v63  ;;  %v400_v19 = vld [vmem:[%s3347_s25 + $0x2c] sm:$0x1] }
  0x1d   : > { %3042 = vmatprep.mubr.msk.bf16.mxu0 %vm227_vm1, %v3264_v23  ;;  %v470_v1 = vpack.c.bf16 %v443_v60, %v440_v59  ;;  %v1580_v2 = vsel %vm437_vm2, %v1578_v54, %v1579_v55  ;;  %v1583_v3 = vsel %vm437_vm2, %v1581_v56, %v1582_v57  ;;  %v3270_v22 = vld [vmem:[%s3347_s25 + $0x80] ss:$8 sps:$4 sm:$0xff]   ;;  %v446_v23 = vsel %vm437_vm2, %v444_v9, %v445_v10  ;;  %v2758_v38 = vld [vmem:[%s3347_s25 + $0x2c] sm:$0x1]  ;;  %v2760_v43 = vld [vmem:[%s3347_s25 + $0x34] sm:$0x1] }
  0x1e   : > { %v1610_v7 = vpack.c.bf16 %v1583_v3, %v1580_v2  ;;  %v1587_v32 = vrot.slane %v1552_v16, 1  ;;  %v414_v33 = vunpack.c.l.bf16 %v398_v11  ;;  %v2757_v34 = vld [vmem:[%s3347_s25 + $0x28] ss:$8 sps:$4 sm:$0xff]   ;;  %v415_v36 = vunpack.c.h.bf16 %v397_v6  ;;  %v404_v54 = vld [vmem:[%s3347_s25 + $0x3c] sm:$0x1] }
  0x1f   : > { %v416_v37 = vunpack.c.l.bf16 %v400_v19  ;;  %v401_v44 = vld [vmem:[%s3347_s25 + $0x30] ss:$8 sps:$4 sm:$0xff]   ;;  %v1554_v48 = vunpack.c.l.bf16 %v2757_v34  ;;  %v1555_v52 = vunpack.c.l.bf16 %v2758_v38  ;;  %v1556_v53 = vunpack.c.h.bf16 %v2757_v34  ;;  %v2762_v60 = vld [vmem:[%s3347_s25 + $0x3c] sm:$0x1]  ;;  %v2621_v16 = vld [vmem:[%s3347_s25 + $0x54] sm:$0x1] }
  0x20   : > { %v453_v46 = vrot.slane %v415_v36, 1  ;;  %v1557_v56 = vunpack.c.l.bf16 %v2760_v43  ;;  %v417_v58 = vunpack.c.l.bf16 %v401_v44  ;;  %v2761_v59 = vld [vmem:[%s3347_s25 + $0x38] ss:$8 sps:$4 sm:$0xff]   ;;  %v419_v2 = vunpack.c.h.bf16 %v401_v44  ;;  %v2618_v10 = vld [vmem:[%s3347_s25 + $0x48] ss:$8 sps:$4 sm:$0xff]  }
  0x21   : > { %v454_v47 = vrot.slane %v416_v37, 1  ;;  %v1590_v57 = vrot.slane %v1554_v48, 1  ;;  %v1591_v62 = vrot.slane %v1555_v52, 1  ;;  %v1593_v63 = vrot.slane %v1556_v53, 1  ;;  %v2773_v34 = vld [vmem:[%s3347_s25 + $0x5c] sm:$0x1] }
  0x22   : > { %v420_v3 = vunpack.c.l.bf16 %v404_v54  ;;  %v456_v4 = vrot.slane %v417_v58, 1  ;;  %v1559_v9 = vunpack.c.l.bf16 %v2762_v60  ;;  %v582_v38 = vunpack.c.h.bf16 %v2618_v10  ;;  %v2775_v52 = vld [vmem:[%s3347_s25 + $0x64] sm:$0x1]  ;;  %v2626_v60 = vld [vmem:[%s3347_s25 + $0x68] ss:$8 sps:$4 sm:$0xff]  }
  0x23   : > { %2963 = vmatmul.mubr.msk.bf16.vlgmr.msra.gmra.mrb[0].mxu1 %vm227_vm1, %v3265_v30  ;;  %v1584_v30 = vrot.slane %v1550_v14, 1  ;;  %v455_v55 = vsel %vm437_vm2, %v453_v46, %v454_v47  ;;  %v1560_v14 = vunpack.c.h.bf16 %v2761_v59  ;;  %v2774_v47 = vld [vmem:[%s3347_s25 + $0x60] ss:$8 sps:$4 sm:$0xff]  }
  0x24   : > { %2971 = vmatpush3.bf16.msra.mxu1 %v489_v24  ;;  %3043 = vmatmul.mubr.msk.bf16.vlgmr.msra.gmra.mrb[0].mxu0 %vm227_vm1, %v3266_v31  ;;  %v1553_v24 = vunpack.c.l.bf16 %v2756_v5  ;;  %v1585_v31 = vrot.slane %v1551_v15, 1  ;;  %v2764_v5 = vld [vmem:[%s3347_s25 + $0x44] sm:$0x1]  ;;  %v2619_v15 = vld [vmem:[%s3347_s25 + $0x4c] sm:$0x1] }
  0x25   : > { %3051 = vmatpush3.bf16.msra.mxu0 %v1629_v25  ;;  %2966 = vmatprep.mubr.msk.bf16.mxu1 %vm227_vm1, %v3267_v42  ;;  %v413_v25 = vunpack.c.l.bf16 %v397_v6  ;;  %v451_v42 = vrot.slane %v414_v33, 1  ;;  %v1592_v6 = vsel %vm437_vm2, %v1590_v57, %v1591_v62  ;;  %v580_v33 = vunpack.c.l.bf16 %v2618_v10 }
  0x26   : > { %3046 = vmatprep.mubr.msk.bf16.mxu0 %vm227_vm1, %v3268_v49  ;;  %3233 = vmatprep.subr.msk.bf16.mxu1 %vm240_vm0, %v3374_v17  ;;  %v448_v17 = vrot.slane %v412_v8, 1  ;;  %v1588_v35 = vrot.slane %v1553_v24, 1  ;;  %v1586_v40 = vsel %vm437_vm2, %v1584_v30, %v1585_v31  ;;  %v402_v49 = vld [vmem:[%s3347_s25 + $0x34] sm:$0x1]  ;;  %v1558_v8 = vunpack.c.l.bf16 %v2761_v59  ;;  %v2770_v24 = vld [vmem:[%s3347_s25 + $0x50] ss:$8 sps:$4 sm:$0xff]  }
  0x27   : > { %3241 = vmatprep.subr.msk.bf16.mxu0 %vm240_vm0, %v3379_v18  ;;  %v450_v41 = vrot.slane %v413_v25, 1  ;;  %v418_v0 = vunpack.c.l.bf16 %v402_v49  ;;  %v2771_v25 = vld [vmem:[%s3347_s25 + $0x54] sm:$0x1]  ;;  %v1597_v31 = vrot.slane %v1559_v9, 1  ;;  %v581_v37 = vunpack.c.l.bf16 %v2619_v15 }
  0x28   : > { %v449_v18 = vsel %vm437_vm2, %v447_v13, %v448_v17  ;;  %v1589_v45 = vsel %vm437_vm2, %v1587_v32, %v1588_v35  ;;  %v460_v13 = vrot.slane %v420_v3, 1  ;;  %v1596_v17 = vrot.slane %v1558_v8, 1 }
  0x29   : > { %v471_v39 = vpack.c.bf16 %v449_v18, %v446_v23  ;;  %v1611_v50 = vpack.c.bf16 %v1589_v45, %v1586_v40  ;;  %v452_v51 = vsel %vm437_vm2, %v450_v41, %v451_v42  ;;  %v1561_v23 = vunpack.c.l.bf16 %v2764_v5  ;;  %v2622_v18 = vld [vmem:[%s3347_s25 + $0x58] ss:$8 sps:$4 sm:$0xff]  }
  0x2a   : > { %v472_v61 = vpack.c.bf16 %v455_v55, %v452_v51  ;;  %v1599_v32 = vrot.slane %v1560_v14, 1  ;;  %v583_v40 = vunpack.c.l.bf16 %v2621_v16  ;;  %v612_v41 = vrot.slane %v580_v33, 1  ;;  %v2630_v33 = vld [vmem:[%s3347_s25 + $0x78] ss:$8 sps:$4 sm:$0xff]  }
  0x2b   : > { %2967 = vmatmul.mubr.msk.bf16.gmra.mrb[4].mxu1 %vm227_vm1, %v3269_v12  ;;  %v459_v12 = vrot.slane %v419_v2, 1  ;;  %v1600_v36 = vrot.slane %v1561_v23, 1  ;;  %v1720_v42 = vunpack.c.l.bf16 %v2770_v24  ;;  %v613_v44 = vrot.slane %v581_v37, 1 }
  0x2c   : > { %3047 = vmatmul.mubr.msk.bf16.gmra.mrb[4].mxu0 %vm227_vm1, %v3270_v22  ;;  %2972 = vmatprep.mubr.msk.bf16.mxu1 %vm227_vm1, %v470_v1  ;;  %v1594_v1 = vrot.slane %v1557_v56, 1  ;;  %v615_v45 = vrot.slane %v582_v38, 1  ;;  %v1721_v46 = vunpack.c.l.bf16 %v2771_v25  ;;  %v616_v49 = vrot.slane %v583_v40, 1  ;;  %v2777_v56 = vld [vmem:[%s3347_s25 + $0x6c] sm:$0x1] }
  0x2d   : > { %3052 = vmatprep.mubr.msk.bf16.mxu0 %vm227_vm1, %v1610_v7  ;;  %v457_v7 = vrot.slane %v418_v0, 1  ;;  %v461_v30 = vsel %vm437_vm2, %v459_v12, %v460_v13  ;;  %v1601_v43 = vsel %vm437_vm2, %v1599_v32, %v1600_v36  ;;  %v1723_v51 = vunpack.c.l.bf16 %v2773_v34  ;;  %v2779_v12 = vld [vmem:[%s3347_s25 + $0x74] sm:$0x1]  ;;  %v3517_v34 = vld [vmem:[%s3796_s1 + $0xa] sm:$0x3] }
  0x2e   : > { %v1595_v11 = vsel %vm437_vm2, %v1593_v63, %v1594_v1  ;;  %v1752_v53 = vrot.slane %v1720_v42, 1  ;;  %v1753_v54 = vrot.slane %v1721_v46, 1  ;;  %v584_v55 = vunpack.c.l.bf16 %v2622_v18  ;;  %v2627_v1 = vld [vmem:[%s3347_s25 + $0x6c] sm:$0x1]  ;;  %v2633_v42 = vld [vmem:[%s3347_s25 + $0x84] sm:$0x1] }
  0x2f   : > { %v1612_v19 = vpack.c.bf16 %v1595_v11, %v1592_v6  ;;  %v458_v22 = vsel %vm437_vm2, %v456_v4, %v457_v7  ;;  %v617_v57 = vsel %vm437_vm2, %v615_v45, %v616_v49  ;;  %v1756_v59 = vrot.slane %v1723_v51, 1  ;;  %v2629_v6 = vld [vmem:[%s3347_s25 + $0x74] sm:$0x1]  ;;  %v2778_v11 = vld [vmem:[%s3347_s25 + $0x70] ss:$8 sps:$4 sm:$0xff]  }
  0x30   : > { %v473_v35 = vpack.c.bf16 %v461_v30, %v458_v22  ;;  %v1754_v62 = vsel %vm437_vm2, %v1752_v53, %v1753_v54  ;;  %v586_v63 = vunpack.c.h.bf16 %v2622_v18  ;;  %v618_v3 = vrot.slane %v584_v55, 1  ;;  %v2782_v51 = vld [vmem:[%s3347_s25 + $0x80] ss:$8 sps:$4 sm:$0xff]  }
  0x31   : > { %v1724_v5 = vunpack.c.l.bf16 %v2774_v47  ;;  %v1725_v10 = vunpack.c.l.bf16 %v2775_v52  ;;  %v1726_v14 = vunpack.c.h.bf16 %v2774_v47  ;;  %v1727_v15 = vunpack.c.l.bf16 %v2777_v56  ;;  %v2783_v52 = vld [vmem:[%s3347_s25 + $0x84] sm:$0x1] }
  0x32   : > { %v621_v8 = vrot.slane %v586_v63, 1  ;;  %v588_v23 = vunpack.c.l.bf16 %v2626_v60  ;;  %v590_v32 = vunpack.c.h.bf16 %v2626_v60  ;;  %v1729_v40 = vunpack.c.l.bf16 %v2779_v12 }
  0x33   : > { %2973 = vmatmul.mubr.msk.bf16.vlgmr.msra.gmra.mrb[0].mxu1 %vm227_vm1, %v471_v39  ;;  %v1598_v39 = vsel %vm437_vm2, %v1596_v17, %v1597_v31  ;;  %v1758_v16 = vrot.slane %v1724_v5, 1  ;;  %v1759_v22 = vrot.slane %v1725_v10, 1  ;;  %v589_v17 = vunpack.c.l.bf16 %v2627_v1 }
  0x34   : > { %2981 = vmatpush3.bf16.msra.mxu1 %v3400_v26  ;;  %3053 = vmatmul.mubr.msk.bf16.vlgmr.msra.gmra.mrb[0].mxu0 %vm227_vm1, %v1611_v50  ;;  %v2623_v26 = vld [vmem:[%s3347_s25 + $0x5c] sm:$0x1]  ;;  %v1613_v48 = vpack.c.bf16 %v1601_v43, %v1598_v39  ;;  %v1722_v50 = vunpack.c.h.bf16 %v2770_v24  ;;  %v1761_v30 = vrot.slane %v1726_v14, 1  ;;  %v1762_v31 = vrot.slane %v1727_v15, 1  ;;  %v3272_v14 = vld [vmem:[%s3347_s25 + $0x98] ss:$8 sps:$4 sm:$0xff]  }
  0x35   : > { %3061 = vmatpush3.bf16.msra.mxu0 %v3404_v27  ;;  %2976 = vmatprep.mubr.msk.bf16.mxu1 %vm227_vm1, %v472_v61  ;;  %v2625_v27 = vld [vmem:[%s3347_s25 + $0x64] sm:$0x1]  ;;  %v2781_v24 = vld [vmem:[%s3347_s25 + $0x7c] sm:$0x1]  ;;  %v1760_v18 = vsel %vm437_vm2, %v1758_v16, %v1759_v22  ;;  %v624_v36 = vrot.slane %v588_v23, 1  ;;  %v625_v37 = vrot.slane %v589_v17, 1  ;;  %v1728_v39 = vunpack.c.l.bf16 %v2778_v11 }
  0x36   : > { %3056 = vmatprep.mubr.msk.bf16.mxu0 %vm227_vm1, %v1612_v19  ;;  %3234 = vmatprep.subr.msk.bf16.mxu1 %vm240_vm0, %v3386_v20  ;;  %v614_v20 = vsel %vm437_vm2, %v612_v41, %v613_v44  ;;  %v1755_v58 = vrot.slane %v1722_v50, 1  ;;  %v587_v0 = vunpack.c.l.bf16 %v2625_v27  ;;  %v1763_v38 = vsel %vm437_vm2, %v1761_v30, %v1762_v31  ;;  %v2631_v41 = vld [vmem:[%s3347_s25 + $0x7c] sm:$0x1]  ;;  %v3526_v27 = vld [vmem:[%s3796_s1 + $0x1a] sm:$0x3] }
  0x37   : > { %3242 = vmatprep.subr.msk.bf16.mxu0 %vm240_vm0, %v3391_v21  ;;  %v585_v21 = vunpack.c.l.bf16 %v2623_v26  ;;  %v644_v61 = vpack.c.bf16 %v617_v57, %v614_v20  ;;  %v627_v26 = vrot.slane %v590_v32, 1  ;;  %v1785_v43 = vpack.c.bf16 %v1763_v38, %v1760_v18  ;;  %v3273_v16 = vld [vmem:[%s3347_s25 + $0xa0] ss:$8 sps:$4 sm:$0xff]   ;;  %v2673_v17 = vld [vmem:[%s3347_s25 + $0x90] ss:$8 sps:$4 sm:$0xff]  }
  0x38   : > { %v1757_v2 = vsel %vm437_vm2, %v1755_v58, %v1756_v59  ;;  %v622_v9 = vrot.slane %v587_v0, 1  ;;  %v626_v44 = vsel %vm437_vm2, %v624_v36, %v625_v37  ;;  %v1730_v46 = vunpack.c.h.bf16 %v2778_v11  ;;  %v2785_v59 = vld [vmem:[%s3347_s25 + $0x8c] sm:$0x1]  ;;  %v3274_v23 = vld [vmem:[%s3347_s25 + $0xa8] ss:$8 sps:$4 sm:$0xff]  }
  0x39   : > { %v619_v4 = vrot.slane %v585_v21, 1  ;;  %v1784_v7 = vpack.c.bf16 %v1757_v2, %v1754_v62  ;;  %v1731_v47 = vunpack.c.l.bf16 %v2781_v24  ;;  %v1765_v49 = vrot.slane %v1729_v40, 1  ;;  %v2674_v24 = vld [vmem:[%s3347_s25 + $0x94] sm:$0x1]  ;;  %v2676_v30 = vld [vmem:[%s3347_s25 + $0x9c] sm:$0x1] }
  0x3a   : > { %v623_v19 = vsel %vm437_vm2, %v621_v8, %v622_v9  ;;  %v592_v50 = vunpack.c.l.bf16 %v2630_v33  ;;  %v1767_v53 = vrot.slane %v1730_v46, 1  ;;  %v593_v54 = vunpack.c.l.bf16 %v2631_v41  ;;  %v3271_v9 = vld [vmem:[%s3347_s25 + $0x90] ss:$8 sps:$4 sm:$0xff]   ;;  %v2826_v32 = vld [vmem:[%s3347_s25 + $0x9c] sm:$0x1] }
  0x3b   : > { %2977 = vmatmul.mubr.msk.bf16.gmra.mrb[4].mxu1 %vm227_vm1, %v473_v35  ;;  %v620_v13 = vsel %vm437_vm2, %v618_v3, %v619_v4  ;;  %v591_v35 = vunpack.c.l.bf16 %v2629_v6  ;;  %v594_v55 = vunpack.c.h.bf16 %v2630_v33  ;;  %v1768_v57 = vrot.slane %v1731_v47, 1  ;;  %v2825_v31 = vld [vmem:[%s3347_s25 + $0x98] ss:$8 sps:$4 sm:$0xff]   ;;  %v2689_v18 = vld [vmem:[%s3796_s1 + $0xc] sm:$0x3] }
  0x3c   : > { %3057 = vmatmul.mubr.msk.bf16.gmra.mrb[4].mxu0 %vm227_vm1, %v1613_v48  ;;  %2982 = vmatprep.mubr.msk.bf16.mxu1 %vm227_vm1, %v644_v61  ;;  %v645_v25 = vpack.c.bf16 %v623_v19, %v620_v13  ;;  %v1764_v48 = vrot.slane %v1728_v39, 1  ;;  %v595_v58 = vunpack.c.l.bf16 %v2633_v42  ;;  %v630_v21 = vrot.slane %v592_v50, 1  ;;  %v3275_v19 = vld [vmem:[%s3347_s25 + $0xb0] ss:$8 sps:$4 sm:$0xff]   ;;  %v2677_v37 = vld [vmem:[%s3347_s25 + $0xa0] ss:$8 sps:$4 sm:$0xff]  }
  0x3d   : > { %3062 = vmatprep.mubr.msk.bf16.mxu0 %vm227_vm1, %v1784_v7  ;;  %v628_v45 = vrot.slane %v591_v35, 1  ;;  %v631_v60 = vrot.slane %v593_v54, 1  ;;  %v633_v61 = vrot.slane %v594_v55, 1  ;;  %v1732_v62 = vunpack.c.l.bf16 %v2782_v51  ;;  %v2828_v35 = vld [vmem:[%s3347_s25 + $0xa4] sm:$0x1] }
  0x3e   : > { %v1766_v56 = vsel %vm437_vm2, %v1764_v48, %v1765_v49  ;;  %v1769_v63 = vsel %vm437_vm2, %v1767_v53, %v1768_v57  ;;  %v634_v0 = vrot.slane %v595_v58, 1  ;;  %v1734_v1 = vunpack.c.h.bf16 %v2782_v51  ;;  %v2678_v38 = vld [vmem:[%s3347_s25 + $0xa4] sm:$0x1]  ;;  %v3277_v49 = vld [vmem:[%s3347_s25 + $0xc0] ss:$8 sps:$4 sm:$0xff]  }
  0x3f   : > { %v629_v20 = vsel %vm437_vm2, %v627_v26, %v628_v45  ;;  %v1786_v2 = vpack.c.bf16 %v1769_v63, %v1766_v56  ;;  %v632_v3 = vsel %vm437_vm2, %v630_v21, %v631_v60  ;;  %v1735_v4 = vunpack.c.l.bf16 %v2785_v59  ;;  %v2680_v26 = vld [vmem:[%s3347_s25 + $0xac] sm:$0x1]  ;;  %v3590_v56 = vld [vmem:[%s3796_s1 + $0xe] sm:$0x3]  ;;  %v2829_v59 = vld [vmem:[%s3347_s25 + $0xa8] ss:$8 sps:$4 sm:$0xff]  }
  0x40   : > { %v1770_v5 = vrot.slane %v1732_v62, 1  ;;  %v635_v6 = vsel %vm437_vm2, %v633_v61, %v634_v0  ;;  %v1773_v8 = vrot.slane %v1734_v1, 1  ;;  %v885_v22 = vsel %vm240_vm0, %v3517_v34, 0  ;;  %v2830_v63 = vld [vmem:[%s3347_s25 + $0xac] sm:$0x1] }
  0x41   : > { %v647_v10 = vpack.c.bf16 %v635_v6, %v632_v3  ;;  %v1774_v11 = vrot.slane %v1735_v4, 1  ;;  %v2025_v33 = vsel %vm240_vm0, %v3526_v27, 0  ;;  %v976_v36 = vunpack.c.l.bf16 %v2673_v17  ;;  %v3280_v0 = vld [vmem:[%s3347_s25 + $0xe0] ss:$8 sps:$4 sm:$0xff]   ;;  %v2681_v6 = vld [vmem:[%s3347_s25 + $0xb0] ss:$8 sps:$4 sm:$0xff]  }
  0x42   : > { %v977_v39 = vunpack.c.l.bf16 %v2674_v24  ;;  %v979_v40 = vunpack.c.l.bf16 %v2676_v30  ;;  %v2116_v41 = vunpack.c.l.bf16 %v2825_v31  ;;  %v2117_v42 = vunpack.c.l.bf16 %v2826_v32  ;;  %v2834_v32 = vld [vmem:[%s3347_s25 + $0xbc] sm:$0x1] }
  0x43   : > { %2983 = vmatmul.mubr.msk.bf16.vlgmr.msra.gmra.mrb[0].mxu1 %vm227_vm1, %v645_v25  ;;  %v1775_v13 = vsel %vm437_vm2, %v1773_v8, %v1774_v11  ;;  %v3276_v25 = vld [vmem:[%s3347_s25 + $0xb8] ss:$8 sps:$4 sm:$0xff]   ;;  %v980_v45 = vunpack.c.l.bf16 %v2677_v37  ;;  %v981_v46 = vunpack.c.l.bf16 %v2678_v38  ;;  %v982_v47 = vunpack.c.h.bf16 %v2677_v37  ;;  %v2684_v8 = vld [vmem:[%s3347_s25 + $0xbc] sm:$0x1]  ;;  %v2686_v37 = vld [vmem:[%s3347_s25 + $0xc4] sm:$0x1] }
  0x44   : > { %2991 = vmatpush3.bf16.msra.mxu1 %v3410_v28  ;;  %3063 = vmatmul.mubr.msk.bf16.vlgmr.msra.gmra.mrb[0].mxu0 %vm227_vm1, %v1785_v43  ;;  %v646_v28 = vpack.c.bf16 %v629_v20, %v626_v44  ;;  %v2118_v43 = vunpack.c.h.bf16 %v2825_v31  ;;  %v2119_v44 = vunpack.c.l.bf16 %v2828_v35  ;;  %v983_v48 = vunpack.c.l.bf16 %v2680_v26  ;;  %v3279_v20 = vld [vmem:[%s3347_s25 + $0xd8] ss:$8 sps:$4 sm:$0xff]  }
  0x45   : > { %3235 = vmatprep.subr.msk.bf16.mxu1 %vm240_vm0, %v3517_v34  ;;  %3071 = vmatpush3.bf16.msra.mxu0 %v3414_v29  ;;  %v1733_v29 = vunpack.c.l.bf16 %v2783_v52  ;;  %v978_v34 = vunpack.c.h.bf16 %v2673_v17  ;;  %v1008_v50 = vrot.slane %v976_v36, 1  ;;  %v3278_v52 = vld [vmem:[%s3347_s25 + $0xc8] ss:$8 sps:$4 sm:$0xff]   ;;  %v1009_v53 = vrot.slane %v977_v39, 1  ;;  %v2833_v31 = vld [vmem:[%s3347_s25 + $0xb8] ss:$8 sps:$4 sm:$0xff]  }
  0x46   : > { %3243 = vmatprep.subr.msk.bf16.mxu0 %vm240_vm0, %v3526_v27  ;;  %2986 = vmatprep.mubr.msk.bf16.mxu1 %vm227_vm1, %v646_v28  ;;  %v2841_v27 = vld [vmem:[%s3796_s1 + $0x1c] sm:$0x3]  ;;  %v1012_v54 = vrot.slane %v979_v40, 1  ;;  %v2148_v55 = vrot.slane %v2116_v41, 1  ;;  %v2149_v28 = vrot.slane %v2117_v42, 1  ;;  %v2151_v57 = vrot.slane %v2118_v43, 1 }
  0x47   : > { %v1771_v7 = vrot.slane %v1733_v29, 1  ;;  %3066 = vmatprep.mubr.msk.bf16.mxu0 %vm227_vm1, %v1786_v2  ;;  %v1011_v51 = vrot.slane %v978_v34, 1  ;;  %v2152_v58 = vrot.slane %v2119_v44, 1  ;;  %v1014_v21 = vrot.slane %v980_v45, 1  ;;  %v2832_v2 = vld [vmem:[%s3347_s25 + $0xb4] sm:$0x1] }
  0x48   : > { %v1015_v60 = vrot.slane %v981_v46, 1  ;;  %v1017_v61 = vrot.slane %v982_v47, 1  ;;  %v1018_v62 = vrot.slane %v983_v48, 1  ;;  %v1059_v29 = vsel %vm240_vm0, %v2689_v18, 0  ;;  %v2836_v36 = vld [vmem:[%s3347_s25 + $0xc4] sm:$0x1] }
  0x49   : > { %v1772_v12 = vsel %vm437_vm2, %v1770_v5, %v1771_v7  ;;  %v3598_v1 = vsel %vm240_vm0, %v2841_v27, 0  ;;  %v3603_v3 = vsel %vm437_vm2, %v1008_v50, %v1009_v53  ;;  %v3606_v4 = vsel %vm437_vm2, %v1011_v51, %v1012_v54  ;;  %v2682_v7 = vld [vmem:[%s3347_s25 + $0xb4] sm:$0x1]  ;;  %v2685_v34 = vld [vmem:[%s3347_s25 + $0xc0] ss:$8 sps:$4 sm:$0xff]  }
  0x4a   : > { %v1787_v15 = vpack.c.bf16 %v1775_v13, %v1772_v12  ;;  %v3609_v5 = vsel %vm437_vm2, %v2148_v55, %v2149_v28  ;;  %v2120_v11 = vunpack.c.l.bf16 %v2829_v59  ;;  %v2121_v12 = vunpack.c.l.bf16 %v2830_v63  ;;  %v3281_v13 = vld [vmem:[%s3347_s25 + $0xe8] ss:$8 sps:$4 sm:$0xff]   ;;  %v2688_v42 = vld [vmem:[%s3347_s25 + $0xcc] sm:$0x1]  ;;  %v2694_v28 = vld [vmem:[%s3347_s25 + $0xd8] ss:$8 sps:$4 sm:$0xff]  }
  0x4b   : > { %2987 = vmatmul.mubr.msk.bf16.gmra.mrb[4].mxu1 %vm227_vm1, %v647_v10  ;;  %v3619_v10 = vsel %vm240_vm0, %v3590_v56, 0  ;;  %v984_v17 = vunpack.c.l.bf16 %v2681_v6  ;;  %v985_v24 = vunpack.c.l.bf16 %v2682_v7  ;;  %v987_v30 = vunpack.c.l.bf16 %v2684_v8  ;;  %v3284_v38 = vld [vmem:[%s3347_s25 + $0x100] ss:$8 sps:$4 sm:$0xff]   ;;  %v2838_v47 = vld [vmem:[%s3347_s25 + $0xcc] sm:$0x1] }
  0x4c   : > { %2992 = vmatprep.mubr.msk.bf16.mxu1 %vm227_vm1, %v3271_v9  ;;  %3067 = vmatmul.mubr.msk.bf16.gmra.mrb[4].mxu0 %vm227_vm1, %v1787_v15  ;;  %v3615_v9 = vsel %vm437_vm2, %v2151_v57, %v2152_v58  ;;  %v3629_v15 = vsel %vm437_vm2, %v1014_v21, %v1015_v60  ;;  %v2154_v39 = vrot.slane %v2120_v11, 1  ;;  %v2155_v40 = vrot.slane %v2121_v12, 1  ;;  %v2837_v46 = vld [vmem:[%s3347_s25 + $0xc8] ss:$8 sps:$4 sm:$0xff]   ;;  %v2695_v57 = vld [vmem:[%s3347_s25 + $0xdc] sm:$0x1] }
  0x4d   : > { %3072 = vmatprep.mubr.msk.bf16.mxu0 %vm227_vm1, %v3272_v14  ;;  %v3626_v14 = vld [vmem:[%s3796_s1 + $0x1e] sm:$0x3]  ;;  %v2180_v35 = vpack.c.bf16 %v3615_v9, %v3609_v5  ;;  %v2124_v44 = vunpack.c.l.bf16 %v2833_v31  ;;  %v2125_v45 = vunpack.c.l.bf16 %v2834_v32  ;;  %v1020_v48 = vrot.slane %v984_v17, 1  ;;  %v2697_v58 = vld [vmem:[%s3347_s25 + $0xe4] sm:$0x1] }
  0x4e   : > { %v3651_v41 = vsel %vm240_vm0, %v3626_v14, 0  ;;  %v1024_v51 = vrot.slane %v987_v30, 1  ;;  %v2127_v53 = vunpack.c.l.bf16 %v2836_v36  ;;  %v988_v54 = vunpack.c.l.bf16 %v2685_v34  ;;  %v2702_v5 = vld [vmem:[%s3347_s25 + $0xf8] ss:$8 sps:$4 sm:$0xff]   ;;  %v2703_v9 = vld [vmem:[%s3347_s25 + $0xfc] sm:$0x1] }
  0x4f   : > { %v989_v55 = vunpack.c.l.bf16 %v2686_v37  ;;  %v991_v21 = vunpack.c.l.bf16 %v2688_v42  ;;  %v2128_v60 = vunpack.c.l.bf16 %v2837_v46  ;;  %v2161_v63 = vrot.slane %v2125_v45, 1  ;;  %v2849_v42 = vld [vmem:[%s3347_s25 + $0xec] sm:$0x1] }
  0x50   : > { %v1151_v7 = vunpack.c.l.bf16 %v2695_v57  ;;  %v1152_v8 = vunpack.c.h.bf16 %v2694_v28  ;;  %v2164_v12 = vrot.slane %v2127_v53, 1 }
  0x51   : > { %v2166_v17 = vrot.slane %v2128_v60, 1 }
  0x52   : > { %v1185_v37 = vrot.slane %v1152_v8, 1  ;;  %v1158_v8 = vunpack.c.l.bf16 %v2702_v5 }
  0x53   : > { %2993 = vmatmul.mubr.msk.bf16.vlgmr.msra.gmra.mrb[0].mxu1 %vm227_vm1, %v3273_v16  ;;  %v3632_v16 = vsel %vm437_vm2, %v1017_v61, %v1018_v62  ;;  %v2129_v61 = vunpack.c.l.bf16 %v2838_v47  ;;  %v2160_v62 = vrot.slane %v2124_v44, 1 }
  0x54   : > { %3001 = vmatpush3.bf16.msra.mxu1 %v885_v22  ;;  %2996 = vmatprep.mubr.msk.bf16.mxu1 %vm227_vm1, %v3275_v19  ;;  %v2122_v19 = vunpack.c.h.bf16 %v2829_v59  ;;  %v2123_v22 = vunpack.c.l.bf16 %v2832_v2  ;;  %v1041_v26 = vpack.c.bf16 %v3632_v16, %v3629_v15  ;;  %v990_v59 = vunpack.c.h.bf16 %v2685_v34  ;;  %v3285_v2 = vld [vmem:[%s3347_s25 + $0x108] ss:$8 sps:$4 sm:$0xff]  }
  0x55   : > { %3236 = vmatprep.subr.msk.bf16.mxu1 %vm240_vm0, %v2689_v18  ;;  %3073 = vmatmul.mubr.msk.bf16.vlgmr.msra.gmra.mrb[0].mxu0 %vm227_vm1, %v3274_v23  ;;  %v3283_v23 = vld [vmem:[%s3347_s25 + $0xf8] ss:$8 sps:$4 sm:$0xff]   ;;  %v1040_v18 = vpack.c.bf16 %v3606_v4, %v3603_v3  ;;  %v1183_v34 = vrot.slane %v1151_v7, 1  ;;  %v2698_v4 = vld [vmem:[%s3347_s25 + $0xe8] ss:$8 sps:$4 sm:$0xff]  }
  0x56   : > { %3081 = vmatpush3.bf16.msra.mxu0 %v2025_v33  ;;  %3076 = vmatprep.mubr.msk.bf16.mxu0 %vm227_vm1, %v3276_v25  ;;  %v986_v25 = vunpack.c.h.bf16 %v2681_v6  ;;  %v3282_v33 = vld [vmem:[%s3347_s25 + $0xf0] ss:$8 sps:$4 sm:$0xff]   ;;  %v2158_v43 = vrot.slane %v2123_v22, 1  ;;  %v1150_v6 = vunpack.c.l.bf16 %v2694_v28  ;;  %v1154_v28 = vunpack.c.l.bf16 %v2698_v4  ;;  %v2853_v7 = vld [vmem:[%s3347_s25 + $0xfc] sm:$0x1] }
  0x57   : > { %3244 = vmatprep.subr.msk.bf16.mxu0 %vm240_vm0, %v2841_v27  ;;  %v2157_v27 = vrot.slane %v2122_v19, 1  ;;  %v1027_v19 = vrot.slane %v989_v55, 1  ;;  %v3286_v22 = vld [vmem:[%s3347_s25 + $0x110] ss:$8 sps:$4 sm:$0xff]   ;;  %v2297_v16 = vunpack.c.l.bf16 %v2853_v7 }
  0x58   : > { %v1023_v50 = vrot.slane %v986_v25, 1  ;;  %v3672_v25 = vsel %vm437_vm2, %v2154_v39, %v2155_v40  ;;  %v1182_v36 = vrot.slane %v1150_v6, 1 }
  0x59   : > { %v3675_v30 = vsel %vm437_vm2, %v2157_v27, %v2158_v43  ;;  %v2162_v27 = vsel %vm437_vm2, %v2160_v62, %v2161_v63  ;;  %v2850_v62 = vld [vmem:[%s3347_s25 + $0xf0] ss:$8 sps:$4 sm:$0xff]   ;;  %v2851_v63 = vld [vmem:[%s3347_s25 + $0xf4] sm:$0x1] }
  0x5a   : > { %v1025_v40 = vsel %vm437_vm2, %v1023_v50, %v1024_v51  ;;  %v2293_v50 = vunpack.c.l.bf16 %v2849_v42  ;;  %v2701_v51 = vld [vmem:[%s3347_s25 + $0xf4] sm:$0x1]  ;;  %v3712_v53 = vsel %vm437_vm2, %v1182_v36, %v1183_v34  ;;  %v2296_v15 = vunpack.c.h.bf16 %v2850_v62 }
  0x5b   : > { %2997 = vmatmul.mubr.msk.bf16.gmra.mrb[4].mxu1 %vm227_vm1, %v3277_v49  ;;  %v1021_v49 = vrot.slane %v985_v24, 1  ;;  %v2167_v24 = vrot.slane %v2129_v61, 1  ;;  %v1157_v61 = vunpack.c.l.bf16 %v2701_v51 }
  0x5c   : > { %3002 = vmatprep.mubr.msk.bf16.mxu1 %vm227_vm1, %v3279_v20  ;;  %v2126_v20 = vunpack.c.h.bf16 %v2833_v31  ;;  %v2326_v6 = vrot.slane %v2293_v50, 1 }
  0x5d   : > { %3077 = vmatmul.mubr.msk.bf16.gmra.mrb[4].mxu0 %vm227_vm1, %v3278_v52  ;;  %v2840_v52 = vld [vmem:[%s3347_s25 + $0xd4] sm:$0x1]  ;;  %v1022_v39 = vsel %vm437_vm2, %v1020_v48, %v1021_v49 }
  0x5e   : > { %3082 = vmatprep.mubr.msk.bf16.mxu0 %vm227_vm1, %v3280_v0  ;;  %v2130_v0 = vunpack.c.h.bf16 %v2837_v46  ;;  %v2163_v11 = vrot.slane %v2126_v20, 1  ;;  %v3696_v46 = vsel %vm437_vm2, %v2166_v17, %v2167_v24  ;;  %v1042_v20 = vpack.c.bf16 %v1025_v40, %v1022_v39  ;;  %v2706_v40 = vld [vmem:[%s3347_s25 + $0x108] ss:$8 sps:$4 sm:$0xff]  }
  0x5f   : > { %v2294_v24 = vunpack.c.l.bf16 %v2850_v62 }
  0x60   : > { %v2169_v31 = vrot.slane %v2130_v0, 1  ;;  %v2165_v43 = vsel %vm437_vm2, %v2163_v11, %v2164_v12  ;;  %v1160_v11 = vunpack.c.h.bf16 %v2702_v5 }
  0x61   : > { %v2182_v55 = vpack.c.bf16 %v2165_v43, %v2162_v27  ;;  %v2328_v39 = vrot.slane %v2294_v24, 1  ;;  %v2707_v27 = vld [vmem:[%s3347_s25 + $0x10c] sm:$0x1] }
  0x62   : > { %v1197_v36 = vrot.slane %v1160_v11, 1 }
  0x63   : > { %3003 = vmatmul.mubr.msk.bf16.vlgmr.msra.gmra.mrb[0].mxu1 %vm227_vm1, %v3281_v13  ;;  %v1026_v13 = vrot.slane %v988_v54, 1 }
  0x64   : > { %3011 = vmatpush3.bf16.msra.mxu1 %v1059_v29  ;;  %3006 = vmatprep.mubr.msk.bf16.mxu1 %vm227_vm1, %v3283_v23  ;;  %v2131_v29 = vunpack.c.l.bf16 %v2840_v52  ;;  %v1029_v23 = vrot.slane %v990_v59, 1  ;;  %v2181_v52 = vpack.c.bf16 %v3675_v30, %v3672_v25  ;;  %v1192_v25 = vrot.slane %v1157_v61, 1 }
  0x65   : > { %3237 = vmatprep.subr.msk.bf16.mxu1 %vm240_vm0, %v3590_v56  ;;  %3083 = vmatmul.mubr.msk.bf16.vlgmr.msra.gmra.mrb[0].mxu0 %vm227_vm1, %v3282_v33  ;;  %v1153_v56 = vunpack.c.l.bf16 %v2697_v58  ;;  %v2846_v33 = vld [vmem:[%s3347_s25 + $0xe0] ss:$8 sps:$4 sm:$0xff]   ;;  %v3690_v44 = vsel %vm437_vm2, %v1026_v13, %v1027_v19  ;;  %v1156_v58 = vunpack.c.h.bf16 %v2698_v4  ;;  %v2855_v19 = vld [vmem:[%s3347_s25 + $0x104] sm:$0x1]  ;;  %v2295_v30 = vunpack.c.l.bf16 %v2851_v63 }
  0x66   : > { %3091 = vmatpush3.bf16.msra.mxu0 %v3598_v1  ;;  %3086 = vmatprep.mubr.msk.bf16.mxu0 %vm227_vm1, %v3284_v38  ;;  %v1030_v1 = vrot.slane %v991_v21, 1  ;;  %v2170_v32 = vrot.slane %v2131_v29, 1  ;;  %v2290_v3 = vunpack.c.l.bf16 %v2846_v33  ;;  %v2292_v49 = vunpack.c.h.bf16 %v2846_v33  ;;  %v2854_v13 = vld [vmem:[%s3347_s25 + $0x100] ss:$8 sps:$4 sm:$0xff]  }
  0x67   : > { %3245 = vmatprep.subr.msk.bf16.mxu0 %vm240_vm0, %v3626_v14  ;;  %v2847_v14 = vld [vmem:[%s3347_s25 + $0xe4] sm:$0x1]  ;;  %v1186_v38 = vrot.slane %v1153_v56, 1  ;;  %v1159_v56 = vunpack.c.l.bf16 %v2703_v9  ;;  %v1191_v17 = vrot.slane %v1156_v58, 1  ;;  %v2861_v58 = vld [vmem:[%s3347_s25 + $0x11c] sm:$0x1] }
  0x68   : > { %v3693_v45 = vsel %vm437_vm2, %v1029_v23, %v1030_v1  ;;  %v3702_v47 = vsel %vm437_vm2, %v2169_v31, %v2170_v32  ;;  %v2291_v48 = vunpack.c.l.bf16 %v2847_v14  ;;  %v2322_v60 = vrot.slane %v2290_v3, 1  ;;  %v2709_v3 = vld [vmem:[%s3347_s25 + $0x114] sm:$0x1] }
  0x69   : > { %v3715_v54 = vsel %vm437_vm2, %v1185_v37, %v1186_v38  ;;  %v1043_v59 = vpack.c.bf16 %v3693_v45, %v3690_v44  ;;  %v2183_v21 = vpack.c.bf16 %v3702_v47, %v3696_v46  ;;  %v1188_v23 = vrot.slane %v1154_v28, 1  ;;  %v2858_v28 = vld [vmem:[%s3347_s25 + $0x110] ss:$8 sps:$4 sm:$0xff]  }
  0x6a   : > { %v1214_v0 = vpack.c.bf16 %v3715_v54, %v3712_v53  ;;  %v2323_v29 = vrot.slane %v2291_v48, 1  ;;  %v2299_v31 = vunpack.c.l.bf16 %v2855_v19  ;;  %v2300_v32 = vunpack.c.h.bf16 %v2854_v13 }
  0x6b   : > { %3007 = vmatmul.mubr.msk.bf16.gmra.mrb[4].mxu1 %vm227_vm1, %v3285_v2  ;;  %v2325_v2 = vrot.slane %v2292_v49, 1  ;;  %v1195_v14 = vrot.slane %v1159_v56, 1  ;;  %v1193_v43 = vsel %vm437_vm2, %v1191_v17, %v1192_v25  ;;  %v2329_v44 = vrot.slane %v2295_v30, 1 }
  0x6c   : > { %3012 = vmatprep.mubr.msk.bf16.mxu1 %vm227_vm1, %v1040_v18  ;;  %v2699_v18 = vld [vmem:[%s3347_s25 + $0xec] sm:$0x1]  ;;  %v2324_v37 = vsel %vm437_vm2, %v2322_v60, %v2323_v29  ;;  %v2332_v45 = vrot.slane %v2297_v16, 1  ;;  %v2337_v48 = vrot.slane %v2300_v32, 1  ;;  %v1163_v53 = vunpack.c.l.bf16 %v2707_v27 }
  0x6d   : > { %3087 = vmatmul.mubr.msk.bf16.gmra.mrb[4].mxu0 %vm227_vm1, %v3286_v22  ;;  %v1155_v57 = vunpack.c.l.bf16 %v2699_v18  ;;  %v2857_v22 = vld [vmem:[%s3347_s25 + $0x10c] sm:$0x1]  ;;  %v2327_v38 = vsel %vm437_vm2, %v2325_v2, %v2326_v6  ;;  %v2335_v18 = vrot.slane %v2299_v31, 1  ;;  %v1164_v54 = vunpack.c.h.bf16 %v2706_v40 }
  0x6e   : > { %3092 = vmatprep.mubr.msk.bf16.mxu0 %vm227_vm1, %v2180_v35  ;;  %v2705_v35 = vld [vmem:[%s3347_s25 + $0x104] sm:$0x1]  ;;  %v2301_v33 = vunpack.c.l.bf16 %v2857_v22  ;;  %v2354_v50 = vpack.c.bf16 %v2327_v38, %v2324_v37  ;;  %v2330_v9 = vsel %vm437_vm2, %v2328_v39, %v2329_v44  ;;  %v2302_v62 = vunpack.c.l.bf16 %v2858_v28 }
  0x6f   : > { %v1161_v12 = vunpack.c.l.bf16 %v2705_v35  ;;  %v1189_v1 = vrot.slane %v1155_v57, 1  ;;  %v2859_v57 = vld [vmem:[%s3347_s25 + $0x114] sm:$0x1]  ;;  %v2305_v29 = vunpack.c.l.bf16 %v2861_v58  ;;  %v1201_v6 = vrot.slane %v1163_v53, 1  ;;  %s2869_s25 = sshll.u32 %s3800_s13, 6 }
  0x70   : > { %v2338_v49 = vrot.slane %v2301_v33, 1  ;;  %v2303_v63 = vunpack.c.l.bf16 %v2859_v57  ;;  %v1203_v7 = vrot.slane %v1164_v54, 1  ;;  %s3778_s28 = scalar_lea.vmem %s3797_s2, %s2869_s25 }
  0x71   : > { %v1198_v34 = vrot.slane %v1161_v12, 1  ;;  %v1190_v42 = vsel %vm437_vm2, %v1188_v23, %v1189_v1  ;;  %v2344_v12 = vrot.slane %v2305_v29, 1 }
  0x72   : > { %v1215_v5 = vpack.c.bf16 %v1193_v43, %v1190_v42  ;;  %v2339_v61 = vsel %vm437_vm2, %v2337_v48, %v2338_v49  ;;  %v2341_v56 = vrot.slane %v2303_v63, 1 }
  0x73   : > { %3013 = vmatmul.mubr.msk.bf16.vlgmr.msra.gmra.mrb[0].mxu1 %vm227_vm1, %v1041_v26  ;;  %v2298_v26 = vunpack.c.l.bf16 %v2854_v13 }
  0x74   : > { %3021 = vmatpush3.bf16.msra.mxu1 %v3619_v10  ;;  %3016 = vmatprep.mubr.msk.bf16.mxu1 %vm227_vm1, %v1042_v20  ;;  %v1194_v10 = vrot.slane %v1158_v8, 1  ;;  %v1162_v20 = vunpack.c.l.bf16 %v2706_v40 }
  0x75   : > { %3093 = vmatmul.mubr.msk.bf16.vlgmr.msra.gmra.mrb[0].mxu0 %vm227_vm1, %v2181_v52  ;;  %v2334_v4 = vrot.slane %v2298_v26, 1  ;;  %v1199_v52 = vsel %vm437_vm2, %v1197_v36, %v1198_v34 }
  0x76   : > { %3101 = vmatpush3.bf16.msra.mxu0 %v3651_v41  ;;  %3096 = vmatprep.mubr.msk.bf16.mxu0 %vm227_vm1, %v2182_v55  ;;  %v2331_v41 = vrot.slane %v2296_v15, 1  ;;  %v1196_v51 = vsel %vm437_vm2, %v1194_v10, %v1195_v14  ;;  %v1165_v55 = vunpack.c.l.bf16 %v2709_v3  ;;  %v1200_v2 = vrot.slane %v1162_v20, 1 }
  0x77   : > { %v2336_v60 = vsel %vm437_vm2, %v2334_v4, %v2335_v18 }
  0x78   : > { %v2333_v35 = vsel %vm437_vm2, %v2331_v41, %v2332_v45  ;;  %v1204_v8 = vrot.slane %v1165_v55, 1  ;;  %v2356_v47 = vpack.c.bf16 %v2339_v61, %v2336_v60  ;;  %v1202_v13 = vsel %vm437_vm2, %v1200_v2, %v1201_v6 }
  0x79   : > { %v2355_v46 = vpack.c.bf16 %v2333_v35, %v2330_v9 }
  0x7a   : > { %v1205_v19 = vsel %vm437_vm2, %v1203_v7, %v1204_v8 }
  0x7b   : > { %3017 = vmatmul.mubr.msk.bf16.gmra.mrb[4].mxu1 %vm227_vm1, %v1043_v59  ;;  %v1216_v59 = vpack.c.bf16 %v1199_v52, %v1196_v51  ;;  %v1217_v22 = vpack.c.bf16 %v1205_v19, %v1202_v13 }
  0x7c   : > { %3022 = vmatprep.mubr.msk.bf16.mxu1 %vm227_vm1, %v1214_v0  ;;  %v2304_v0 = vunpack.c.h.bf16 %v2858_v28 }
  0x7d   : > { %3097 = vmatmul.mubr.msk.bf16.gmra.mrb[4].mxu0 %vm227_vm1, %v2183_v21  ;;  %v2340_v21 = vrot.slane %v2302_v62, 1 }
  0x7e   : > { %3102 = vmatprep.mubr.msk.bf16.mxu0 %vm227_vm1, %v2354_v50  ;;  %v2343_v11 = vrot.slane %v2304_v0, 1 }
  0x7f   : > { %v2342_v23 = vsel %vm437_vm2, %v2340_v21, %v2341_v56 }
  0x80   : > { %v2345_v1 = vsel %vm437_vm2, %v2343_v11, %v2344_v12 }
  0x81   : > { %v2357_v17 = vpack.c.bf16 %v2345_v1, %v2342_v23 }
  0x83   : > { %3023 = vmatmul.mubr.msk.bf16.vlgmr.msra.gmra.mrb[0].mxu1 %vm227_vm1, %v1215_v5 }
  0x84   : > { %3026 = vmatprep.mubr.msk.bf16.mxu1 %vm227_vm1, %v1216_v59 }
  0x85   : > { %3103 = vmatmul.mubr.msk.bf16.vlgmr.msra.gmra.mrb[0].mxu0 %vm227_vm1, %v2355_v46 }
  0x86   : > { %3106 = vmatprep.mubr.msk.bf16.mxu0 %vm227_vm1, %v2356_v47 }
  0x8b   : > { %3027 = vmatmul.mubr.msk.bf16.gmra.mrb[4].mxu1 %vm227_vm1, %v1217_v22 }
  0x8d   : > { %3107 = vmatmul.mubr.msk.bf16.gmra.mrb[4].mxu0 %vm227_vm1, %v2357_v17 }
 0x156   : > { %v3024_v24 = vpop.f32.mrb[0].mxu1 }
 0x157   : > { %v1269_v25 = vpop.f32.mrb[1].mxu1 }
 0x158   : > { %v3025_v30 = vpop.f32.mrb[2].mxu1  ;;  %v3104_v15 = vpop.f32.mrb[0].mxu0 }
 0x159   : > { %v1272_v16 = vpop.f32.mrb[3].mxu1  ;;  %v3110_v26 = vadd.f32 %v3104_v15, %v3024_v24  ;;  %v2409_v31 = vpop.f32.mrb[1].mxu0 }
 0x15a   : > { %v3111_v32 = vadd.f32 %v2409_v31, %v1269_v25  ;;  %v3105_v33 = vpop.f32.mrb[2].mxu0 }
 0x15b   : > { %2450 = vst [vmem:[%s3778_s28 + $0x10] sm:$0xff] %v3110_v26  ;;  %v3112_v10 = vadd.f32 %v3105_v33, %v3025_v30  ;;  %v2412_v14 = vpop.f32.mrb[3].mxu0  ;;  %v2471_v27 = vmul.f32 %v3110_v26, %v3110_v26 }
 0x15c   : > { %2448 = vst [vmem:[%s3778_s28] sm:$0xff] %v3111_v32  ;;  %v3113_v36 = vadd.f32 %v2412_v14, %v1272_v16  ;;  %v2469_v37 = vmul.f32 %v3111_v32, %v3111_v32 }
 0x15d   : > { %2451 = vst [vmem:[%s3778_s28 + $0x18] sm:$0xff] %v3112_v10  ;;  %v2472_v18 = vmul.f32 %v3112_v10, %v3112_v10 }
 0x15e   : > { %v3028_v34 = vpop.f32.mrb[4].mxu1  ;;  %2449 = vst [vmem:[%s3778_s28 + $0x8] sm:$0xff] %v3113_v36  ;;  %v2456_v38 = vadd.f32 %v3113_v36, %v3111_v32  ;;  %v2470_v42 = vmul.f32 %v3113_v36, %v3113_v36 }
 0x15f   : > { %v1285_v39 = vpop.f32.mrb[5].mxu1 }
 0x160   : > { %v3029_v40 = vpop.f32.mrb[6].mxu1  ;;  %v2457_v43 = vadd.f32 %v3110_v26, %v2456_v38  ;;  %v2477_v44 = vadd.f32 %v2470_v42, %v2469_v37  ;;  %v3108_v41 = vpop.f32.mrb[4].mxu0 }
 0x161   : > { %v1288_v45 = vpop.f32.mrb[7].mxu1  ;;  %v3114_v3 = vadd.f32 %v3108_v41, %v3028_v34  ;;  %v2425_v4 = vpop.f32.mrb[5].mxu0 }
 0x162   : > { %v2478_v48 = vadd.f32 %v2477_v44, %v2471_v27  ;;  %v3115_v49 = vadd.f32 %v2425_v4, %v1285_v39  ;;  %v2458_v50 = vadd.f32 %v3112_v10, %v2457_v43  ;;  %v3109_v51 = vpop.f32.mrb[6].mxu0 }
 0x163   : > { %2454 = vst [vmem:[%s3778_s28 + $0x30] sm:$0xff] %v3114_v3  ;;  %v3116_v52 = vadd.f32 %v3109_v51, %v3029_v40  ;;  %v2428_v20 = vpop.f32.mrb[7].mxu0  ;;  %v2475_v9 = vmul.f32 %v3114_v3, %v3114_v3 }
 0x164   : > { %2452 = vst [vmem:[%s3778_s28 + $0x20] sm:$0xff] %v3115_v49  ;;  %v2459_v53 = vadd.f32 %v3115_v49, %v2458_v50  ;;  %v2473_v54 = vmul.f32 %v3115_v49, %v3115_v49  ;;  %v2479_v55 = vadd.f32 %v2478_v48, %v2472_v18  ;;  %v3117_v28 = vadd.f32 %v2428_v20, %v1288_v45 }
 0x165   : > { %2455 = vst [vmem:[%s3778_s28 + $0x38] sm:$0xff] %v3116_v52  ;;  %v2476_v60 = vmul.f32 %v3116_v52, %v3116_v52 }
 0x166   : > { %v2480_v57 = vadd.f32 %v2479_v55, %v2473_v54  ;;  %2453 = vst [vmem:[%s3778_s28 + $0x28] sm:$0xff] %v3117_v28  ;;  %v2460_v58 = vadd.f32 %v3117_v28, %v2459_v53  ;;  %v2474_v5 = vmul.f32 %v3117_v28, %v3117_v28 }
 0x168   : > { %v2461_v35 = vadd.f32 %v3114_v3, %v2460_v58  ;;  %v2481_v59 = vadd.f32 %v2480_v57, %v2474_v5 }
 0x16a   : > { %v2462_v61 = vadd.f32 %v3116_v52, %v2461_v35  ;;  %v2482_v62 = vadd.f32 %v2481_v59, %v2475_v9 }
 0x16c   : > { %v2463_v63 = vrot.slane %v2462_v61, 4  ;;  %v2483_v0 = vadd.f32 %v2482_v62, %v2476_v60 }
 0x16e   : > { %v2464_v29 = vadd.f32 %v2463_v63, %v2462_v61  ;;  %v2484_v2 = vrot.slane %v2483_v0, 4 }
 0x170   : > { %v2465_v6 = vrot.slane %v2464_v29, 2  ;;  %v2485_v7 = vadd.f32 %v2484_v2, %v2483_v0 }
 0x172   : > { %v2466_v8 = vadd.f32 %v2465_v6, %v2464_v29  ;;  %v2486_v46 = vrot.slane %v2485_v7, 2 }
 0x174   : > { %v2467_v47 = vrot.slane %v2466_v8, 1  ;;  %v2487_v21 = vadd.f32 %v2486_v46, %v2485_v7 }
 0x176   : > { %v2488_v56 = vrot.slane %v2487_v21, 1  ;;  %v2468_v11 = vadd.f32 %v2467_v47, %v2466_v8 }
 0x178   : > { %v2489_v12 = vadd.f32 %v2488_v56, %v2487_v21 }
 0x17a   : > { %v2491_v13 = vsel %vm2490_vm3, %v2468_v11, %v2489_v12 }
 0x17b   : > { %2492 = vst [vmem:[%s181_s5] sm:$0x3] %v2491_v13 }
 0x17c PF: > { %s14_s12 = sadd.s32 1, %s3293_s12  }
 0x17d   : > { %p11_p4 = scmp.ge.s32.totalorder %s14_s12, 4  }
 0x17f   :  { %13 = sbr.rel (!%p11_p4) target bundleno = 1 (0x1), region = 92 }

</bundles_post_ra>
